<compile_context>
chip_gen: v6e
topology: v6e:2x2x1
jax: 0.10.0
libtpu: 0.0.40
codegen_flags: <defaults>
</compile_context>

<pallas_src>
import functools

import jax
import jax.numpy as jnp
from jax import lax
from jax.experimental import pallas as pl
from jax.experimental.pallas import tpu as pltpu

LSTM_HIDDEN = 256
FC_HIDDEN = 128


# --------------------------------------------------------------------------
# Kernel
# --------------------------------------------------------------------------
def _dna_bert_lstm_kernel(hs_ref, wih_hbm, whh_hbm, b_ref,
                          w1_ref, b1_ref, w2_ref, b2_ref,
                          out_ref,
                          wih_vmem, whh_vmem, w_sem,
                          acc_ref, gx_ref, hseq_ref,
                          *, seq_len, seq_tile):
    H = LSTM_HIDDEN
    pid = pl.program_id(0)
    nsteps = pl.num_programs(0)

    # ---- first grid step: init pooling accumulator and kick off the weight
    #      DMAs (single-buffered VMEM scratch; completion is overlapped with
    #      the whole HBM-bound pooling phase). ----
    @pl.when(pid == 0)
    def _init():
        acc_ref[...] = jnp.zeros_like(acc_ref)
        pltpu.make_async_copy(wih_hbm, wih_vmem, w_sem.at[0]).start()
        pltpu.make_async_copy(whh_hbm, whh_vmem, w_sem.at[1]).start()

    # ---- per-tile sum over the sequence axis (cast per tile only).
    #      Mask only the ragged last tile; elide masking when S % tile == 0. ----
    if seq_len % seq_tile == 0:
        acc_ref[...] += jnp.sum(hs_ref[...].astype(jnp.float32), axis=1)
    else:
        @pl.when(pid < nsteps - 1)
        def _full_tile():
            acc_ref[...] += jnp.sum(hs_ref[...].astype(jnp.float32), axis=1)

        @pl.when(pid == nsteps - 1)
        def _ragged_tile():
            valid = seq_len - pid * seq_tile
            row_id = lax.broadcasted_iota(jnp.int32, (1, seq_tile, 1), 1)
            tile = jnp.where(row_id < valid,
                             hs_ref[...].astype(jnp.float32), 0.0)
            acc_ref[...] += jnp.sum(tile, axis=1)

    # ---- tail (LSTM scan over batch + FC head) only on the last grid step ----
    @pl.when(pid == nsteps - 1)
    def _tail():
        # The weight DMAs were started at pid==0; by now they are hidden
        # behind the pooling phase.
        pltpu.make_async_copy(wih_hbm, wih_vmem, w_sem.at[0]).wait()
        pltpu.make_async_copy(whh_hbm, whh_vmem, w_sem.at[1]).wait()

        B = hseq_ref.shape[0]
        xm = acc_ref[...] * jnp.float32(1.0 / seq_len)        # mean pool, (B, Hb)

        # Hoisted input projection: one batched bf16 MXU matmul (f32 acc)
        # instead of B M=1 ones.  Gate column order is [i, f, o, g].
        gx_ref[...] = (jnp.dot(xm.astype(jnp.bfloat16), wih_vmem[...],
                               preferred_element_type=jnp.float32)
                       + b_ref[...])                          # (B, 4H) f32

        def step(t, carry):
            h, c = carry
            # Read W_hh straight from the (single) VMEM copy; no value hoist.
            gates = gx_ref[pl.ds(t, 1), :] + jnp.dot(
                h.astype(jnp.bfloat16), whh_vmem[...],
                preferred_element_type=jnp.float32)           # (1, 4H)
            sig = jax.nn.sigmoid(gates[:, :3 * H])            # i | f | o in one slab
            i_g = sig[:, 0 * H:1 * H]
            f_g = sig[:, 1 * H:2 * H]
            o_g = sig[:, 2 * H:3 * H]
            g_g = jnp.tanh(gates[:, 3 * H:4 * H])
            c = f_g * c + i_g * g_g
            h = o_g * jnp.tanh(c)
            hseq_ref[pl.ds(t, 1), :] = h                      # bounded live range
            return (h, c)

        h0 = jnp.zeros((1, H), jnp.float32)
        c0 = jnp.zeros((1, H), jnp.float32)
        lax.fori_loop(0, B, step, (h0, c0), unroll=min(B, 8))

        # fc: ReLU -> Linear(256,128) -> Linear(128,num_classes), kept f32
        # (tiny matrices, negligible cost, preserves accuracy).
        y = jnp.maximum(hseq_ref[...], 0.0)
        y = jnp.dot(y, w1_ref[...], preferred_element_type=jnp.float32) + b1_ref[...]
        y = jnp.dot(y, w2_ref[...], preferred_element_type=jnp.float32) + b2_ref[...]
        out_ref[...] = y.astype(out_ref.dtype)


# --------------------------------------------------------------------------
# Wrapper
# --------------------------------------------------------------------------
def _vmem_budget():
    """Per-generation (vmem_limit_bytes, tile_budget_bytes).

    v5e/v6e: 128 MiB physical -> 64 MiB scoped limit.
    v7x:      64 MiB physical -> 48 MiB scoped limit.
    """
    try:
        info = pltpu.get_tpu_info()
        cap = int(getattr(info, "vmem_capacity_bytes", 64 * 1024 * 1024))
    except Exception:  # pragma: no cover - conservative fallback
        cap = 64 * 1024 * 1024
    limit = min(64 * 1024 * 1024, (3 * cap) // 4)
    budget = limit - 4 * 1024 * 1024        # headroom for compiler scratch
    return limit, budget


def _choose_seq_tile(B, S, Hb, itemsize, budget_bytes, fixed_bytes):
    """Largest sublane-aligned sequence tile that keeps 2x (double-buffered)
    input tiles plus the fixed VMEM footprint inside the budget."""
    if S <= 8:
        return S
    per_buf = max(512 * 1024, (budget_bytes - fixed_bytes) // 2)
    per_buf = min(per_buf, 8 * 1024 * 1024)     # diminishing returns past ~8 MiB
    ts = per_buf // max(1, B * Hb * itemsize)
    if ts >= S:
        return S
    return max(8, (ts // 8) * 8)


def _const_spec(shape):
    n = len(shape)
    return pl.BlockSpec(shape, lambda s, n=n: (0,) * n)


def dna_bert_lstm_head(last_hidden_states, params, *, seq_tile=None):
    B, S, Hb = last_hidden_states.shape
    H = LSTM_HIDDEN
    num_classes = params["w2"].shape[1]

    small = (params["b"], params["w1"], params["b1"], params["w2"], params["b2"])
    fixed_bytes = (
        int(params["wih"].size) * params["wih"].dtype.itemsize      # single-buffered
        + int(params["whh"].size) * params["whh"].dtype.itemsize    # single-buffered
        + 2 * sum(int(v.size) * v.dtype.itemsize for v in small)    # small consts (x2)
        + B * Hb * 4 + B * 4 * H * 4 + B * H * 4                    # f32 scratch
        + 2 * B * num_classes * 4)                                  # output buffers

    vmem_limit, budget = _vmem_budget()
    ts = seq_tile if seq_tile is not None else _choose_seq_tile(
        B, S, Hb, last_hidden_states.dtype.itemsize, budget, fixed_bytes)
    grid = (pl.cdiv(S, ts),)

    kernel = functools.partial(_dna_bert_lstm_kernel, seq_len=S, seq_tile=ts)

    flops = (B * S * Hb
             + 2 * B * Hb * 4 * H
             + 2 * B * H * 4 * H
             + 2 * B * H * FC_HIDDEN
             + 2 * B * FC_HIDDEN * num_classes)
    transcendentals = B * (4 * H + H)
    bytes_accessed = (int(last_hidden_states.size) * last_hidden_states.dtype.itemsize
                      + sum(int(v.size) * v.dtype.itemsize for v in params.values())
                      + B * num_classes * 4)

    return pl.pallas_call(
        kernel,
        out_shape=jax.ShapeDtypeStruct((B, num_classes), jnp.float32),
        grid_spec=pltpu.PrefetchScalarGridSpec(
            num_scalar_prefetch=0,
            grid=grid,
            in_specs=[
                pl.BlockSpec((B, ts, Hb), lambda s: (0, s, 0)),   # pipelined input
                pl.BlockSpec(memory_space=pl.ANY),                # wih (Hb,4H) bf16, manual DMA
                pl.BlockSpec(memory_space=pl.ANY),                # whh (H,4H)  bf16, manual DMA
                _const_spec(params["b"].shape),                   # (1, 4H)
                _const_spec(params["w1"].shape),                  # (256, 128)
                _const_spec(params["b1"].shape),                  # (1, 128)
                _const_spec(params["w2"].shape),                  # (128, C)
                _const_spec(params["b2"].shape),                  # (1, C)
            ],
            out_specs=pl.BlockSpec((B, num_classes), lambda s: (0, 0)),
            scratch_shapes=[
                pltpu.VMEM(params["wih"].shape, params["wih"].dtype),  # W_ih copy
                pltpu.VMEM(params["whh"].shape, params["whh"].dtype),  # W_hh copy
                pltpu.SemaphoreType.DMA((2,)),                         # weight DMA sems
                pltpu.VMEM((B, Hb), jnp.float32),          # pooling accumulator
                pltpu.VMEM((B, 4 * H), jnp.float32),       # hoisted gate projection
                pltpu.VMEM((B, H), jnp.float32),           # LSTM hidden sequence
            ],
        ),
        compiler_params=pltpu.CompilerParams(
            dimension_semantics=("arbitrary",),            # sequence reduction axis
            vmem_limit_bytes=int(vmem_limit),
        ),
        cost_estimate=pl.CostEstimate(
            flops=flops,
            transcendentals=transcendentals,
            bytes_accessed=bytes_accessed,
        ),
    )(last_hidden_states, params["wih"], params["whh"], params["b"],
      params["w1"], params["b1"], params["w2"], params["b2"])


# --------------------------------------------------------------------------
# Parameter preparation (PyTorch layout -> kernel layout) and reference
# --------------------------------------------------------------------------
def _reorder_gate_cols(w):
    """Columns ordered [i, f, g, o] (PyTorch) -> [i, f, o, g] (kernel)."""
    H = LSTM_HIDDEN
    return jnp.concatenate(
        [w[:, 0:H], w[:, H:2 * H], w[:, 3 * H:4 * H], w[:, 2 * H:3 * H]], axis=1)


def prepare_params(tp):
    """Transpose to (in, out), fold biases, reorder gate columns.
    The two big LSTM matmul weights are stored bf16 (MXU-native, half HBM/VMEM);
    biases and the tiny FC layers stay f32."""
    return {
        "wih": _reorder_gate_cols(tp["weight_ih_l0"].T).astype(jnp.bfloat16),  # (Hb, 4H)
        "whh": _reorder_gate_cols(tp["weight_hh_l0"].T).astype(jnp.bfloat16),  # (H, 4H)
        "b": _reorder_gate_cols((tp["bias_ih_l0"] + tp["bias_hh_l0"])[None, :]),
        "w1": tp["fc1_w"].T,                                              # (256, 128)
        "b1": tp["fc1_b"][None, :],                                       # (1, 128)
        "w2": tp["fc2_w"].T,                                              # (128, C)
        "b2": tp["fc2_b"][None, :],                                       # (1, C)
    }


def init_torch_params(key, bert_hidden, num_classes):
    """PyTorch-shaped parameters (as nn.LSTM / nn.Linear store them)."""
    ks = jax.random.split(key, 8)
    s = 0.05
    H = LSTM_HIDDEN
    return {
        "weight_ih_l0": jax.random.normal(ks[0], (4 * H, bert_hidden), jnp.float32) * s,
        "weight_hh_l0": jax.random.normal(ks[1], (4 * H, H), jnp.float32) * s,
        "bias_ih_l0": jax.random.normal(ks[2], (4 * H,), jnp.float32) * s,
        "bias_hh_l0": jax.random.normal(ks[3], (4 * H,), jnp.float32) * s,
        "fc1_w": jax.random.normal(ks[4], (FC_HIDDEN, H), jnp.float32) * s,
        "fc1_b": jax.random.normal(ks[5], (FC_HIDDEN,), jnp.float32) * s,
        "fc2_w": jax.random.normal(ks[6], (num_classes, FC_HIDDEN), jnp.float32) * s,
        "fc2_b": jax.random.normal(ks[7], (num_classes,), jnp.float32) * s,
    }


def reference(hs, tp):
    """Pure-JAX f32 reference in original PyTorch gate order / layout."""
    H = LSTM_HIDDEN
    xm = jnp.mean(hs.astype(jnp.float32), axis=1)
    wih = tp["weight_ih_l0"].T
    whh = tp["weight_hh_l0"].T
    b = (tp["bias_ih_l0"] + tp["bias_hh_l0"])[None, :]
    h = jnp.zeros((1, H), jnp.float32)
    c = jnp.zeros((1, H), jnp.float32)
    rows = []
    for t in range(hs.shape[0]):
        gates = xm[t:t + 1, :] @ wih + h @ whh + b
        i = jax.nn.sigmoid(gates[:, 0 * H:1 * H])
        f = jax.nn.sigmoid(gates[:, 1 * H:2 * H])
        g = jnp.tanh(gates[:, 2 * H:3 * H])
        o = jax.nn.sigmoid(gates[:, 3 * H:4 * H])
        c = f * c + i * g
        h = o * jnp.tanh(c)
        rows.append(h)
    y = jnp.maximum(jnp.concatenate(rows, axis=0), 0.0)
    y = y @ tp["fc1_w"].T + tp["fc1_b"]
    y = y @ tp["fc2_w"].T + tp["fc2_b"]
    return y


if __name__ == "__main__":
    # Small synthetic shapes consistent with the module's forward.
    B, S, H_BERT, NUM_CLASSES = 2, 12, 32, 3

    key = jax.random.PRNGKey(0)
    k_hs, k_p = jax.random.split(key)
    last_hidden_states = jax.random.normal(k_hs, (B, S, H_BERT), jnp.float32)
    torch_params = init_torch_params(k_p, H_BERT, NUM_CLASSES)
    params = prepare_params(torch_params)
    ref = reference(last_hidden_states, torch_params)

    # Multi-step grid path (forced 8-row tile): exercises accumulator init,
    # ragged-tail masking and the cross-iteration weight-DMA overlap.
    out_tiled = jax.block_until_ready(
        dna_bert_lstm_head(last_hidden_states, params, seq_tile=8))
    # Default auto-sized tile (single grid step on these tiny shapes).
    out_auto = jax.block_until_ready(
        dna_bert_lstm_head(last_hidden_states, params))

    assert out_tiled.shape == (B, NUM_CLASSES)
    assert out_auto.shape == (B, NUM_CLASSES)
    # bf16 W_ih / W_hh MXU operands perturb slightly vs the f32 reference.
    assert jnp.allclose(out_tiled, ref, atol=2e-3, rtol=2e-3), (out_tiled, ref)
    assert jnp.allclose(out_auto, ref, atol=2e-3, rtol=2e-3), (out_auto, ref)

    # TODO(synk): DNA-BERT encoder + tokenizer are external pretrained
    # components; the kernel consumes their output (last_hidden_states) directly.
    print("KERNEL_OK")
</pallas_src>

<mosaic_0001>
module attributes {stable_mosaic.version = 11 : i64} {
  func.func @_dna_bert_lstm_kernel(%arg0: i32, %arg1: memref<2x8x32xf32, #tpu.memory_space<vmem>>, %arg2: memref<32x1024xbf16, #tpu.memory_space<any>>, %arg3: memref<256x1024xbf16, #tpu.memory_space<any>>, %arg4: memref<1x1024xf32, #tpu.memory_space<vmem>>, %arg5: memref<256x128xf32, #tpu.memory_space<vmem>>, %arg6: memref<1x128xf32, #tpu.memory_space<vmem>>, %arg7: memref<128x3xf32, #tpu.memory_space<vmem>>, %arg8: memref<1x3xf32, #tpu.memory_space<vmem>>, %arg9: memref<2x3xf32, #tpu.memory_space<vmem>>, %arg10: memref<32x1024xbf16, #tpu.memory_space<vmem>>, %arg11: memref<256x1024xbf16, #tpu.memory_space<vmem>>, %arg12: memref<2x!tpu.dma_semaphore, #tpu.memory_space<semaphore_mem>>, %arg13: memref<2x32xf32, #tpu.memory_space<vmem>>, %arg14: memref<2x1024xf32, #tpu.memory_space<vmem>>, %arg15: memref<2x256xf32, #tpu.memory_space<vmem>>) attributes {dimension_semantics = [#tpu.dimension_semantics<arbitrary>], iteration_bounds = array<i64: 2>, scalar_prefetch = 0 : i64, scratch_operands = 6 : i64, tpu.core_type = #tpu.core_type<tc>, window_params = [{transform_indices = @transform_0, window_bounds = array<i64: 2, 8, 32>}, {}, {}, {pipeline_mode = #tpu.pipeline_mode<synchronous>, transform_indices = @transform_3, window_bounds = array<i64: 1, 1024>}, {pipeline_mode = #tpu.pipeline_mode<synchronous>, transform_indices = @transform_4, window_bounds = array<i64: 256, 128>}, {pipeline_mode = #tpu.pipeline_mode<synchronous>, transform_indices = @transform_5, window_bounds = array<i64: 1, 128>}, {pipeline_mode = #tpu.pipeline_mode<synchronous>, transform_indices = @transform_6, window_bounds = array<i64: 128, 3>}, {pipeline_mode = #tpu.pipeline_mode<synchronous>, transform_indices = @transform_7, window_bounds = array<i64: 1, 3>}, {pipeline_mode = #tpu.pipeline_mode<synchronous>, transform_indices = @transform_8, window_bounds = array<i64: 2, 3>}]} {
    %c0_i32 = arith.constant 0 : i32
    %0 = arith.cmpi eq, %arg0, %c0_i32 : i32
    %1 = arith.extui %0 : i1 to i32
    %c0_i32_0 = arith.constant 0 : i32
    %2 = arith.cmpi ne, %1, %c0_i32_0 : i32
    scf.if %2 {
      %cst = arith.constant 0.000000e+00 : f32
      %12 = vector.broadcast %cst : f32 to vector<2x32xf32>
      %c0 = arith.constant 0 : index
      %c0_6 = arith.constant 0 : index
      %13 = vector.load %arg13[%c0, %c0_6] : memref<2x32xf32, #tpu.memory_space<vmem>>, vector<2x32xf32>
      tpu.vector_store %arg13[%c0, %c0_6], %12 {strides = array<i32>} : memref<2x32xf32, #tpu.memory_space<vmem>>, vector<2x32xf32>,
      %c0_i32_7 = arith.constant 0 : i32
      %14 = tpu.memref_slice %arg12[%c0_i32_7] : memref<2x!tpu.dma_semaphore, #tpu.memory_space<semaphore_mem>> -> memref<1x!tpu.dma_semaphore, #tpu.memory_space<semaphore_mem>>
      %15 = tpu.memref_squeeze %14 : memref<1x!tpu.dma_semaphore, #tpu.memory_space<semaphore_mem>> -> memref<!tpu.dma_semaphore, #tpu.memory_space<semaphore_mem>>
      tpu.enqueue_dma source(%arg2 : memref<32x1024xbf16, #tpu.memory_space<any>>) target(%arg10 : memref<32x1024xbf16, #tpu.memory_space<vmem>>) target_semaphore(%15 : memref<!tpu.dma_semaphore, #tpu.memory_space<semaphore_mem>>)
      %c1_i32_8 = arith.constant 1 : i32
      %16 = tpu.memref_slice %arg12[%c1_i32_8] : memref<2x!tpu.dma_semaphore, #tpu.memory_space<semaphore_mem>> -> memref<1x!tpu.dma_semaphore, #tpu.memory_space<semaphore_mem>>
      %17 = tpu.memref_squeeze %16 : memref<1x!tpu.dma_semaphore, #tpu.memory_space<semaphore_mem>> -> memref<!tpu.dma_semaphore, #tpu.memory_space<semaphore_mem>>
      tpu.enqueue_dma source(%arg3 : memref<256x1024xbf16, #tpu.memory_space<any>>) target(%arg11 : memref<256x1024xbf16, #tpu.memory_space<vmem>>) target_semaphore(%17 : memref<!tpu.dma_semaphore, #tpu.memory_space<semaphore_mem>>)
    } else {
    }
    %c1_i32 = arith.constant 1 : i32
    %3 = arith.cmpi slt, %arg0, %c1_i32 : i32
    %4 = arith.extui %3 : i1 to i32
    %c0_i32_1 = arith.constant 0 : i32
    %5 = arith.cmpi ne, %4, %c0_i32_1 : i32
    scf.if %5 {
      %c0 = arith.constant 0 : index
      %c0_6 = arith.constant 0 : index
      %12 = vector.load %arg13[%c0, %c0_6] : memref<2x32xf32, #tpu.memory_space<vmem>>, vector<2x32xf32>
      %c0_7 = arith.constant 0 : index
      %c0_8 = arith.constant 0 : index
      %c0_9 = arith.constant 0 : index
      %13 = vector.load %arg1[%c0_7, %c0_8, %c0_9] : memref<2x8x32xf32, #tpu.memory_space<vmem>>, vector<2x8x32xf32>
      %cst = arith.constant dense<0.000000e+00> : vector<2x32xf32>
      %14 = vector.multi_reduction <add>, %13, %cst [1] : vector<2x8x32xf32> to vector<2x32xf32>
      %15 = arith.addf %12, %14 : vector<2x32xf32>
      %c0_10 = arith.constant 0 : index
      %c0_11 = arith.constant 0 : index
      %16 = vector.load %arg13[%c0_10, %c0_11] : memref<2x32xf32, #tpu.memory_space<vmem>>, vector<2x32xf32>
      tpu.vector_store %arg13[%c0_10, %c0_11], %15 {strides = array<i32>} : memref<2x32xf32, #tpu.memory_space<vmem>>, vector<2x32xf32>,
    } else {
    }
    %c1_i32_2 = arith.constant 1 : i32
    %6 = arith.cmpi eq, %arg0, %c1_i32_2 : i32
    %7 = arith.extui %6 : i1 to i32
    %c0_i32_3 = arith.constant 0 : i32
    %8 = arith.cmpi ne, %7, %c0_i32_3 : i32
    scf.if %8 {
      %c8_i32 = arith.constant 8 : i32
      %12 = arith.muli %arg0, %c8_i32 : i32
      %c12_i32 = arith.constant 12 : i32
      %13 = arith.subi %c12_i32, %12 : i32
      %14 = tpu.iota {dimensions = array<i32: 1>} : vector<1x8x1xi32>
      %15 = vector.broadcast %13 : i32 to vector<1x8x1xi32>
      %16 = arith.cmpi slt, %14, %15 : vector<1x8x1xi32>
      %c0 = arith.constant 0 : index
      %c0_6 = arith.constant 0 : index
      %c0_7 = arith.constant 0 : index
      %17 = vector.load %arg1[%c0, %c0_6, %c0_7] : memref<2x8x32xf32, #tpu.memory_space<vmem>>, vector<2x8x32xf32>
      %cst = arith.constant 0.000000e+00 : f32
      %18 = vector.shape_cast %16 : vector<1x8x1xi1> to vector<1x8x1xi1>
      %19 = vector.broadcast %18 : vector<1x8x1xi1> to vector<2x8x32xi1>
      %20 = vector.broadcast %cst : f32 to vector<2x8x32xf32>
      %21 = arith.select %19, %17, %20 : vector<2x8x32xi1>, vector<2x8x32xf32>
      %c0_8 = arith.constant 0 : index
      %c0_9 = arith.constant 0 : index
      %22 = vector.load %arg13[%c0_8, %c0_9] : memref<2x32xf32, #tpu.memory_space<vmem>>, vector<2x32xf32>
      %cst_10 = arith.constant dense<0.000000e+00> : vector<2x32xf32>
      %23 = vector.multi_reduction <add>, %21, %cst_10 [1] : vector<2x8x32xf32> to vector<2x32xf32>
      %24 = arith.addf %22, %23 : vector<2x32xf32>
      %c0_11 = arith.constant 0 : index
      %c0_12 = arith.constant 0 : index
      %25 = vector.load %arg13[%c0_11, %c0_12] : memref<2x32xf32, #tpu.memory_space<vmem>>, vector<2x32xf32>
      tpu.vector_store %arg13[%c0_11, %c0_12], %24 {strides = array<i32>} : memref<2x32xf32, #tpu.memory_space<vmem>>, vector<2x32xf32>,
    } else {
    }
    %c1_i32_4 = arith.constant 1 : i32
    %9 = arith.cmpi eq, %arg0, %c1_i32_4 : i32
    %10 = arith.extui %9 : i1 to i32
    %c0_i32_5 = arith.constant 0 : i32
    %11 = arith.cmpi ne, %10, %c0_i32_5 : i32
    scf.if %11 {
      %c0_i32_6 = arith.constant 0 : i32
      %12 = tpu.memref_slice %arg12[%c0_i32_6] : memref<2x!tpu.dma_semaphore, #tpu.memory_space<semaphore_mem>> -> memref<1x!tpu.dma_semaphore, #tpu.memory_space<semaphore_mem>>
      %13 = tpu.memref_squeeze %12 : memref<1x!tpu.dma_semaphore, #tpu.memory_space<semaphore_mem>> -> memref<!tpu.dma_semaphore, #tpu.memory_space<semaphore_mem>>
      tpu.wait_dma2 semaphore(%13 : memref<!tpu.dma_semaphore, #tpu.memory_space<semaphore_mem>>) src(%arg2 : memref<32x1024xbf16, #tpu.memory_space<any>>) dst(%arg10 : memref<32x1024xbf16, #tpu.memory_space<vmem>>)
      %c1_i32_7 = arith.constant 1 : i32
      %14 = tpu.memref_slice %arg12[%c1_i32_7] : memref<2x!tpu.dma_semaphore, #tpu.memory_space<semaphore_mem>> -> memref<1x!tpu.dma_semaphore, #tpu.memory_space<semaphore_mem>>
      %15 = tpu.memref_squeeze %14 : memref<1x!tpu.dma_semaphore, #tpu.memory_space<semaphore_mem>> -> memref<!tpu.dma_semaphore, #tpu.memory_space<semaphore_mem>>
      tpu.wait_dma2 semaphore(%15 : memref<!tpu.dma_semaphore, #tpu.memory_space<semaphore_mem>>) src(%arg3 : memref<256x1024xbf16, #tpu.memory_space<any>>) dst(%arg11 : memref<256x1024xbf16, #tpu.memory_space<vmem>>)
      %c0 = arith.constant 0 : index
      %c0_8 = arith.constant 0 : index
      %16 = vector.load %arg13[%c0, %c0_8] : memref<2x32xf32, #tpu.memory_space<vmem>>, vector<2x32xf32>
      %cst = arith.constant 0.0833333358 : f32
      %17 = vector.broadcast %cst : f32 to vector<2x32xf32>
      %18 = arith.mulf %16, %17 : vector<2x32xf32>
      %19 = arith.truncf %18 : vector<2x32xf32> to vector<2x32xbf16>
      %c0_9 = arith.constant 0 : index
      %c0_10 = arith.constant 0 : index
      %20 = vector.load %arg10[%c0_9, %c0_10] : memref<32x1024xbf16, #tpu.memory_space<vmem>>, vector<32x1024xbf16>
      %cst_11 = arith.constant dense<0.000000e+00> : vector<2x1024xf32>
      %21 = tpu.matmul %19, %20, %cst_11 {dimension_numbers = #tpu.dot_dimension_numbers<[1], [0], [0], [1], [0, 0, 1, 1], [], []>} : vector<2x32xbf16>, vector<32x1024xbf16>, vector<2x1024xf32> -> vector<2x1024xf32>
      %c0_12 = arith.constant 0 : index
      %c0_13 = arith.constant 0 : index
      %22 = vector.load %arg4[%c0_12, %c0_13] : memref<1x1024xf32, #tpu.memory_space<vmem>>, vector<1x1024xf32>
      %23 = vector.broadcast %22 : vector<1x1024xf32> to vector<2x1024xf32>
      %24 = arith.addf %21, %23 : vector<2x1024xf32>
      %c0_14 = arith.constant 0 : index
      %c0_15 = arith.constant 0 : index
      %25 = vector.load %arg14[%c0_14, %c0_15] : memref<2x1024xf32, #tpu.memory_space<vmem>>, vector<2x1024xf32>
      tpu.vector_store %arg14[%c0_14, %c0_15], %24 {strides = array<i32>} : memref<2x1024xf32, #tpu.memory_space<vmem>>, vector<2x1024xf32>,
      %cst_16 = arith.constant 0.000000e+00 : f32
      %26 = vector.broadcast %cst_16 : f32 to vector<1x256xf32>
      %cst_17 = arith.constant 0.000000e+00 : f32
      %27 = vector.broadcast %cst_17 : f32 to vector<1x256xf32>
      %c0_i32_18 = arith.constant 0 : i32
      %28 = arith.index_cast %c0_i32_18 : i32 to index
      %c0_19 = arith.constant 0 : index
      %29 = vector.load %arg14[%28, %c0_19] : memref<2x1024xf32, #tpu.memory_space<vmem>>, vector<1x1024xf32>
      %30 = arith.truncf %26 : vector<1x256xf32> to vector<1x256xbf16>
      %c0_20 = arith.constant 0 : index
      %c0_21 = arith.constant 0 : index
      %31 = vector.load %arg11[%c0_20, %c0_21] : memref<256x1024xbf16, #tpu.memory_space<vmem>>, vector<256x1024xbf16>
      %cst_22 = arith.constant dense<0.000000e+00> : vector<1x1024xf32>
      %32 = tpu.matmul %30, %31, %cst_22 {dimension_numbers = #tpu.dot_dimension_numbers<[1], [0], [0], [1], [0, 0, 1, 1], [], []>} : vector<1x256xbf16>, vector<256x1024xbf16>, vector<1x1024xf32> -> vector<1x1024xf32>
      %33 = arith.addf %29, %32 : vector<1x1024xf32>
      %34 = vector.extract_strided_slice %33 {offsets = [0, 0], sizes = [1, 768], strides = [1, 1]} : vector<1x1024xf32> to vector<1x768xf32>
      %35 = arith.negf %34 : vector<1x768xf32>
      %36 = math.exp %35 : vector<1x768xf32>
      %cst_23 = arith.constant 1.000000e+00 : f32
      %37 = vector.broadcast %cst_23 : f32 to vector<1x768xf32>
      %38 = arith.addf %37, %36 : vector<1x768xf32>
      %39 = arith.divf %37, %38 : vector<1x768xf32>
      %40 = vector.extract_strided_slice %39 {offsets = [0, 0], sizes = [1, 256], strides = [1, 1]} : vector<1x768xf32> to vector<1x256xf32>
      %41 = vector.extract_strided_slice %39 {offsets = [0, 256], sizes = [1, 256], strides = [1, 1]} : vector<1x768xf32> to vector<1x256xf32>
      %42 = vector.extract_strided_slice %39 {offsets = [0, 512], sizes = [1, 256], strides = [1, 1]} : vector<1x768xf32> to vector<1x256xf32>
      %43 = vector.extract_strided_slice %33 {offsets = [0, 768], sizes = [1, 256], strides = [1, 1]} : vector<1x1024xf32> to vector<1x256xf32>
      %44 = math.tanh %43 : vector<1x256xf32>
      %45 = arith.mulf %41, %27 : vector<1x256xf32>
      %46 = arith.mulf %40, %44 : vector<1x256xf32>
      %47 = arith.addf %45, %46 : vector<1x256xf32>
      %48 = math.tanh %47 : vector<1x256xf32>
      %49 = arith.mulf %42, %48 : vector<1x256xf32>
      %50 = arith.index_cast %c0_i32_18 : i32 to index
      %c0_24 = arith.constant 0 : index
      %51 = vector.load %arg15[%50, %c0_24] : memref<2x256xf32, #tpu.memory_space<vmem>>, vector<1x256xf32>
      tpu.vector_store %arg15[%50, %c0_24], %49 {strides = array<i32>} : memref<2x256xf32, #tpu.memory_space<vmem>>, vector<1x256xf32>,
      %c1_i32_25 = arith.constant 1 : i32
      %52 = arith.index_cast %c1_i32_25 : i32 to index
      %c0_26 = arith.constant 0 : index
      %53 = vector.load %arg14[%52, %c0_26] : memref<2x1024xf32, #tpu.memory_space<vmem>>, vector<1x1024xf32>
      %54 = arith.truncf %49 : vector<1x256xf32> to vector<1x256xbf16>
      %c0_27 = arith.constant 0 : index
      %c0_28 = arith.constant 0 : index
      %55 = vector.load %arg11[%c0_27, %c0_28] : memref<256x1024xbf16, #tpu.memory_space<vmem>>, vector<256x1024xbf16>
      %cst_29 = arith.constant dense<0.000000e+00> : vector<1x1024xf32>
      %56 = tpu.matmul %54, %55, %cst_29 {dimension_numbers = #tpu.dot_dimension_numbers<[1], [0], [0], [1], [0, 0, 1, 1], [], []>} : vector<1x256xbf16>, vector<256x1024xbf16>, vector<1x1024xf32> -> vector<1x1024xf32>
      %57 = arith.addf %53, %56 : vector<1x1024xf32>
      %58 = vector.extract_strided_slice %57 {offsets = [0, 0], sizes = [1, 768], strides = [1, 1]} : vector<1x1024xf32> to vector<1x768xf32>
      %59 = arith.negf %58 : vector<1x768xf32>
      %60 = math.exp %59 : vector<1x768xf32>
      %cst_30 = arith.constant 1.000000e+00 : f32
      %61 = vector.broadcast %cst_30 : f32 to vector<1x768xf32>
      %62 = arith.addf %61, %60 : vector<1x768xf32>
      %63 = arith.divf %61, %62 : vector<1x768xf32>
      %64 = vector.extract_strided_slice %63 {offsets = [0, 0], sizes = [1, 256], strides = [1, 1]} : vector<1x768xf32> to vector<1x256xf32>
      %65 = vector.extract_strided_slice %63 {offsets = [0, 256], sizes = [1, 256], strides = [1, 1]} : vector<1x768xf32> to vector<1x256xf32>
      %66 = vector.extract_strided_slice %63 {offsets = [0, 512], sizes = [1, 256], strides = [1, 1]} : vector<1x768xf32> to vector<1x256xf32>
      %67 = vector.extract_strided_slice %57 {offsets = [0, 768], sizes = [1, 256], strides = [1, 1]} : vector<1x1024xf32> to vector<1x256xf32>
      %68 = math.tanh %67 : vector<1x256xf32>
      %69 = arith.mulf %65, %47 : vector<1x256xf32>
      %70 = arith.mulf %64, %68 : vector<1x256xf32>
      %71 = arith.addf %69, %70 : vector<1x256xf32>
      %72 = math.tanh %71 : vector<1x256xf32>
      %73 = arith.mulf %66, %72 : vector<1x256xf32>
      %74 = arith.index_cast %c1_i32_25 : i32 to index
      %c0_31 = arith.constant 0 : index
      %75 = vector.load %arg15[%74, %c0_31] : memref<2x256xf32, #tpu.memory_space<vmem>>, vector<1x256xf32>
      tpu.vector_store %arg15[%74, %c0_31], %73 {strides = array<i32>} : memref<2x256xf32, #tpu.memory_space<vmem>>, vector<1x256xf32>,
      %c2_i32 = arith.constant 2 : i32
      %c0_32 = arith.constant 0 : index
      %c0_33 = arith.constant 0 : index
      %76 = vector.load %arg15[%c0_32, %c0_33] : memref<2x256xf32, #tpu.memory_space<vmem>>, vector<2x256xf32>
      %cst_34 = arith.constant 0.000000e+00 : f32
      %77 = vector.broadcast %cst_34 : f32 to vector<2x256xf32>
      %78 = arith.maximumf %76, %77 : vector<2x256xf32>
      %c0_35 = arith.constant 0 : index
      %c0_36 = arith.constant 0 : index
      %79 = vector.load %arg5[%c0_35, %c0_36] : memref<256x128xf32, #tpu.memory_space<vmem>>, vector<256x128xf32>
      %cst_37 = arith.constant dense<0.000000e+00> : vector<2x128xf32>
      %80 = tpu.matmul %78, %79, %cst_37 {dimension_numbers = #tpu.dot_dimension_numbers<[1], [0], [0], [1], [0, 0, 1, 1], [], []>} : vector<2x256xf32>, vector<256x128xf32>, vector<2x128xf32> -> vector<2x128xf32>
      %c0_38 = arith.constant 0 : index
      %c0_39 = arith.constant 0 : index
      %81 = vector.load %arg6[%c0_38, %c0_39] : memref<1x128xf32, #tpu.memory_space<vmem>>, vector<1x128xf32>
      %82 = vector.broadcast %81 : vector<1x128xf32> to vector<2x128xf32>
      %83 = arith.addf %80, %82 : vector<2x128xf32>
      %c0_40 = arith.constant 0 : index
      %c0_41 = arith.constant 0 : index
      %84 = vector.load %arg7[%c0_40, %c0_41] : memref<128x3xf32, #tpu.memory_space<vmem>>, vector<128x3xf32>
      %cst_42 = arith.constant dense<0.000000e+00> : vector<2x3xf32>
      %85 = tpu.matmul %83, %84, %cst_42 {dimension_numbers = #tpu.dot_dimension_numbers<[1], [0], [0], [1], [0, 0, 1, 1], [], []>} : vector<2x128xf32>, vector<128x3xf32>, vector<2x3xf32> -> vector<2x3xf32>
      %c0_43 = arith.constant 0 : index
      %c0_44 = arith.constant 0 : index
      %86 = vector.load %arg8[%c0_43, %c0_44] : memref<1x3xf32, #tpu.memory_space<vmem>>, vector<1x3xf32>
      %87 = vector.broadcast %86 : vector<1x3xf32> to vector<2x3xf32>
      %88 = arith.addf %85, %87 : vector<2x3xf32>
      %c0_45 = arith.constant 0 : index
      %c0_46 = arith.constant 0 : index
      %89 = vector.load %arg9[%c0_45, %c0_46] : memref<2x3xf32, #tpu.memory_space<vmem>>, vector<2x3xf32>
      tpu.vector_store %arg9[%c0_45, %c0_46], %88 {strides = array<i32>} : memref<2x3xf32, #tpu.memory_space<vmem>>, vector<2x3xf32>,
    } else {
    }
    return
  }
  func.func @transform_0(%arg0: i32) -> (i32, i32, i32) {
    %c0_i32 = arith.constant 0 : i32
    %c0_i32_0 = arith.constant 0 : i32
    %c0_i32_1 = arith.constant 0 : i32
    return %c0_i32, %arg0, %c0_i32_0 : i32, i32, i32
  }
  func.func @transform_3(%arg0: i32) -> (i32, i32) {
    %c0_i32 = arith.constant 0 : i32
    %c0_i32_0 = arith.constant 0 : i32
    %c0_i32_1 = arith.constant 0 : i32
    return %c0_i32, %c0_i32_0 : i32, i32
  }
  func.func @transform_4(%arg0: i32) -> (i32, i32) {
    %c0_i32 = arith.constant 0 : i32
    %c0_i32_0 = arith.constant 0 : i32
    %c0_i32_1 = arith.constant 0 : i32
    return %c0_i32, %c0_i32_0 : i32, i32
  }
  func.func @transform_5(%arg0: i32) -> (i32, i32) {
    %c0_i32 = arith.constant 0 : i32
    %c0_i32_0 = arith.constant 0 : i32
    %c0_i32_1 = arith.constant 0 : i32
    return %c0_i32, %c0_i32_0 : i32, i32
  }
  func.func @transform_6(%arg0: i32) -> (i32, i32) {
    %c0_i32 = arith.constant 0 : i32
    %c0_i32_0 = arith.constant 0 : i32
    %c0_i32_1 = arith.constant 0 : i32
    return %c0_i32, %c0_i32_0 : i32, i32
  }
  func.func @transform_7(%arg0: i32) -> (i32, i32) {
    %c0_i32 = arith.constant 0 : i32
    %c0_i32_0 = arith.constant 0 : i32
    %c0_i32_1 = arith.constant 0 : i32
    return %c0_i32, %c0_i32_0 : i32, i32
  }
  func.func @transform_8(%arg0: i32) -> (i32, i32) {
    %c0_i32 = arith.constant 0 : i32
    %c0_i32_0 = arith.constant 0 : i32
    %c0_i32_1 = arith.constant 0 : i32
    return %c0_i32, %c0_i32_0 : i32, i32
  }
}

</mosaic_0001>

<bundles_post_ra>
// kernel: tpu_custom_call.1
= control target key start
LH: loop header
LB: loop body
LE: loop exit
PB: predicated region body
PF: predicated region fallthrough
CT: control target
= control target key end

     0   :  { %13 = vsyncpa [#allocation10], 0  ;;  %s4622_s0 = inlined_call_operand.vmem [shape: f32[2,12,32], index: 0, kind: input, shape index: {}]   ;;  %s4623_s1 = inlined_call_operand.vmem [shape: bf16[32,1024], index: 1, kind: input, shape index: {}]   ;;  %s4624_s2 = inlined_call_operand.hbm [shape: bf16[256,1024], index: 2, kind: input, shape index: {}]   ;;  %s4625_s3 = inlined_call_operand.vmem [shape: f32[1,1024], index: 3, kind: input, shape index: {}]   ;;  %s4626_s4 = inlined_call_operand.hbm [shape: f32[256,128], index: 4, kind: input, shape index: {}]   ;;  %s4627_s5 = inlined_call_operand.vmem [shape: f32[1,128], index: 5, kind: input, shape index: {}]   ;;  %s4628_s6 = inlined_call_operand.vmem [shape: f32[128,3], index: 6, kind: input, shape index: {}]   ;;  %s4629_s7 = inlined_call_operand.vmem [shape: f32[1,3], index: 7, kind: input, shape index: {}]   ;;  %s4630_s8 = inlined_call_operand.hbm [shape: f32[2,3], index: 8, kind: output, shape index: {}]  }
   0x1   :  { %14 = vsyncpa [#allocation11], 0  ;;  %s3799_s27 = smov 0   ;;  %s3801_s28 = smov 0  }
   0x2   :  { %s3803_s29 = smov 0  }
   0x3 LB: > { %s3815_s30 = sadd.s32 4294967295, %s3741_s29   ;;  %s3818_s9 = sadd.s32 1, %s3741_s29   ;;  %s3741_s29 = sphi %s3803_s29, %s4866_s29   ;;  %s3737_s28 = sphi %s3801_s28, %s4865_s28   ;;  %s3733_s27 = sphi %s3799_s27, %s4864_s27  }
   0x4   : > { %s24_s10 = ssub.s32 %s3741_s29, %s3818_s9  ;;  %s27_s11 = sadd.s32 1, %s3737_s28 }
   0x5   : > { %p25_p0 = scmp.eq.s32.totalorder %s24_s10, 0  ;;  %p34_p1 = scmp.ne.s32.totalorder %s3737_s28, %s3733_s27 }
   0x6   : > { %p35_p2 = scmp.eq.s32.totalorder %s3741_s29, 0  ;;  %p3167_p3 = scmp.ge.s32.totalorder %s3741_s29, 1 }
   0x7   : > { %s3828_s12 = scalar_select %p25_p0, %s3737_s28, %s27_s11  }
   0x8   : > { %p3830_p4 = por %p35_p2, %p34_p1  ;;  %p177_p5 = scmp.lt.s32.totalorder %s3741_s29, 3 }
   0x9   : > { %p3564_p7 = scmp.eq.s32.totalorder %s3815_s30, 0  ;;  %s3743_s15 = smov [#allocation9]  }
   0xa   : > { %p3837_p8 = pnand %p3167_p3, %p177_p5  ;;  %s192_s16 = sshll.u32 %s3743_s15, 4  ;;  %s193_s16 = int_to_ptr.vmem [resolvable:$true] %s192_s16 }
   0xb   : > { %s3648_s17 = scalar_lea.vmem %s193_s16, 4096  ;;  %p3656_p1 = scmp.lt.s32.totalorder %s193_s16, %s193_s16 }
   0xc   : > { %p3560_p9 = pneg %p3837_p8  ;;  %p3649_p12 = scmp.ne.s32.totalorder %s193_s16, %s3648_s17 }
   0xd   : > { %p3657_p2 = scmp.lt.s32.totalorder %s3648_s17, %s3648_s17 }
   0xe   : > { %p3561_p10 = pnand %p3564_p7, %p3560_p9 }
   0xf   : > { %p3658_p6 = por %p3657_p2, %p3656_p1 }
  0x10   : > { %p3639_p11 = pneg %p3561_p10 }
  0x12   : > { %p3651_p13 = pnand %p3649_p12, %p3639_p11 }
  0x14   : > { %p3652_p0 = pneg %p3651_p13 }
  0x16   : > { %p3659_p3 = pnand %p3658_p6, %p3652_p0 }
  0x18   : > { %3662 = shalt.err (!%p3659_p3)
}
  0x19   : > { %s3744_s18 = smov 128   ;;  %s3745_s19 = smov 8  }
  0x1a   : > { %3563 = dma.hbm_to_vmem [thread:$0]  (!%p3561_p10), %s4626_s4, 4096, %s193_s16, [#allocation10], %s3744_s18, %s3744_s18, %s3745_s19  }
  0x1b   : > { %p3169_p5 = scmp.ge.s32.totalorder %s3741_s29, 2 }
  0x1d   : > { %211 = sbr.rel (%p3169_p5) target bundleno = 39 (0x27), region = 36 }
  0x22   : > { %214 = sbr.rel (!%p3830_p4) target bundleno = 39 (0x27), region = 40  ;;  %s216_s22 = sand.u32 (%p3830_p4), 1, %s3737_s28  }
  0x23   : > { %s3171_s23 = sshll.u32 (%p3830_p4), %s3741_s29, 3  ;;  %s3170_s24 = sshll.u32 (%p3830_p4), %s216_s22, 4 }
  0x24   : > { %s220_s10 = scalar_lea.vmem (%p3830_p4), %s4622_s0, %s3171_s23  ;;  %s218_s11 = scalar_lea.vmem (%p3830_p4), [#allocation8], %s3170_s24 }
  0x25   : > { %v251_v0 = vld [vmem:[%s220_s10] sm:$0xff] (%p3830_p4)  ;;  %v253_v1 = vld [vmem:[%s220_s10 + $0x10] sm:$0xff] (%p3830_p4) }
  0x26   : > { %252 = vst [vmem:[%s218_s11] sm:$0xff] (%p3830_p4), %v251_v0  ;;  %254 = vst [vmem:[%s218_s11 + $0x8] sm:$0xff] (%p3830_p4), %v253_v1 }
  0x27 PF: > { %263 = sbr.rel (%p3837_p8) target bundleno = 1295 (0x50f), region = 78  ;;  %s266_s13 = sand.u32 (!%p3837_p8), 1, %s3733_s27  }
  0x28   : > { %s3173_s15 = sshll.u32 (!%p3837_p8), %s266_s13, 4 }
  0x29   : > { %s3859_s29 = scalar_lea.vmem (!%p3837_p8), [#allocation8], %s3173_s15 }
  0x2c   : > { %3720 = dma.done.wait (%p3564_p7), [#allocation10], 4096  }
  0x2d   : > { %3722 = vsyncadd (%p3564_p7), [#allocation10], 4294963200  ;;  %p4711_p4 = scmp.ne.s32.totalorder %s3815_s30, 0 }
  0x2f   : > { %298 = sbr.rel (%p4711_p4) target bundleno = 73 (0x49), region = 90 }
  0x34   : > { %vm299_vm0 = vcmask 254976   ;;  %v334_v2 = vld [vmem:[%s4623_s1] sm:$0xff]  ;;  %v336_v3 = vld [vmem:[%s4623_s1 + $0x8] sm:$0xff]  ;;  %v338_v4 = vld [vmem:[%s4623_s1 + $0x10] sm:$0xff]  ;;  %v3746_v5 = vmov 0.0  }
  0x35   : > { %300 = vst.msk [vmem:[#allocation5] sm:$0x3] %vm299_vm0, %v3746_v5  ;;  %335 = vst [vmem:[#allocation2 + $0x30] sm:$0xff] %v334_v2  ;;  %v340_v6 = vld [vmem:[%s4623_s1 + $0x18] sm:$0xff]  ;;  %v342_v7 = vld [vmem:[%s4623_s1 + $0x20] sm:$0xff] }
  0x36   : > { %337 = vst [vmem:[#allocation2] sm:$0xff] %v336_v3  ;;  %339 = vst [vmem:[#allocation2 + $0x58] sm:$0xff] %v338_v4  ;;  %v344_v8 = vld [vmem:[%s4623_s1 + $0x28] sm:$0xff]  ;;  %v346_v9 = vld [vmem:[%s4623_s1 + $0x30] sm:$0xff] }
  0x37   : > { %341 = vst [vmem:[#allocation2 + $0x18] sm:$0xff] %v340_v6  ;;  %343 = vst [vmem:[#allocation2 + $0x50] sm:$0xff] %v342_v7  ;;  %v348_v10 = vld [vmem:[%s4623_s1 + $0x38] sm:$0xff]  ;;  %v350_v11 = vld [vmem:[%s4623_s1 + $0x40] sm:$0xff] }
  0x38   : > { %345 = vst [vmem:[#allocation2 + $0x68] sm:$0xff] %v344_v8  ;;  %347 = vst [vmem:[#allocation2 + $0x8] sm:$0xff] %v346_v9  ;;  %v352_v12 = vld [vmem:[%s4623_s1 + $0x48] sm:$0xff]  ;;  %v354_v13 = vld [vmem:[%s4623_s1 + $0x50] sm:$0xff] }
  0x39   : > { %349 = vst [vmem:[#allocation2 + $0x48] sm:$0xff] %v348_v10  ;;  %351 = vst [vmem:[#allocation2 + $0x40] sm:$0xff] %v350_v11  ;;  %v356_v14 = vld [vmem:[%s4623_s1 + $0x58] sm:$0xff]  ;;  %v358_v15 = vld [vmem:[%s4623_s1 + $0x60] sm:$0xff] }
  0x3a   : > { %353 = vst [vmem:[#allocation2 + $0x20] sm:$0xff] %v352_v12  ;;  %355 = vst [vmem:[#allocation2 + $0x10] sm:$0xff] %v354_v13  ;;  %v360_v16 = vld [vmem:[%s4623_s1 + $0x68] sm:$0xff]  ;;  %v362_v17 = vld [vmem:[%s4623_s1 + $0x70] sm:$0xff] }
  0x3b   : > { %357 = vst [vmem:[#allocation2 + $0x38] sm:$0xff] %v356_v14  ;;  %359 = vst [vmem:[#allocation2 + $0x60] sm:$0xff] %v358_v15  ;;  %v364_v18 = vld [vmem:[%s4623_s1 + $0x78] sm:$0xff] }
  0x3c   : > { %361 = vst [vmem:[#allocation2 + $0x70] sm:$0xff] %v360_v16  ;;  %363 = vst [vmem:[#allocation2 + $0x78] sm:$0xff] %v362_v17 }
  0x3d   : > { %365 = vst [vmem:[#allocation2 + $0x28] sm:$0xff] %v364_v18 }
  0x3e   : > { %373 = vsyncadd [#allocation4], 2048  ;;  %s3747_s13 = smov [#allocation3]  }
  0x3f   : > { %s382_s15 = sshll.u32 %s3747_s13, 4  ;;  %s383_s15 = int_to_ptr.vmem [resolvable:$true] %s382_s15 }
  0x40   : > { %s3671_s16 = scalar_lea.vmem %s383_s15, 16384  ;;  %p3676_p7 = scmp.lt.s32.totalorder %s383_s15, %s383_s15 }
  0x41   : > { %p3672_p6 = scmp.ne.s32.totalorder %s383_s15, %s3671_s16  ;;  %p3677_p8 = scmp.lt.s32.totalorder %s3671_s16, %s3671_s16 }
  0x43   : > { %p3678_p9 = por %p3677_p8, %p3676_p7 }
  0x45   : > { %p3679_p10 = pnand %p3678_p9, %p3672_p6 }
  0x47   : > { %3682 = shalt.err (!%p3679_p10)  }
  0x48   : > { %385 = dma.hbm_to_vmem [thread:$0]  %s4624_s2, 16384, %s383_s15, [#allocation4 + $0x1] }
  0x49 PF: > { %p3176_p11 = scmp.ge.s32.totalorder %s3815_s30, 1 }
  0x4b   : > { %389 = sbr.rel (%p3176_p11) target bundleno = 98 (0x62), region = 132 }
  0x50   : > { %v391_v19 = vld [vmem:[%s3859_s29] sm:$0xff]  ;;  %v392_v20 = vld [vmem:[%s3859_s29 + $0x8] sm:$0xff]  ;;  %vm393_vm1 = vcmask 261120   ;;  %vm410_vm2 = vcmask 1041409   ;;  %vm414_vm3 = vcmask 254976  }
  0x51   : > { %v394_v21 = vsel %vm393_vm1, %v391_v19, 0.0  ;;  %v401_v22 = vsel %vm393_vm1, %v392_v20, 0.0  ;;  %v390_v33 = vld [vmem:[#allocation5] sm:$0x3] }
  0x52   : > { %v395_v23 = vrot.slane %v394_v21, 4  ;;  %v402_v24 = vrot.slane %v401_v22, 4 }
  0x54   : > { %v396_v25 = vadd.f32 %v395_v23, %v394_v21  ;;  %v403_v26 = vadd.f32 %v402_v24, %v401_v22 }
  0x56   : > { %v397_v27 = vrot.slane %v396_v25, 2  ;;  %v404_v28 = vrot.slane %v403_v26, 2 }
  0x58   : > { %v398_v29 = vadd.f32 %v397_v27, %v396_v25  ;;  %v405_v30 = vadd.f32 %v404_v28, %v403_v26 }
  0x5a   : > { %v399_v31 = vrot.slane %v398_v29, 1  ;;  %v406_v32 = vrot.slane %v405_v30, 1 }
  0x5c   : > { %v400_v34 = vadd.f32 %v399_v31, %v398_v29  ;;  %v407_v35 = vadd.f32 %v406_v32, %v405_v30 }
  0x5e   : > { %v411_v36 = vsel %vm410_vm2, %v407_v35, %v400_v34 }
  0x5f   : > { %v413_v37 = vadd.f32 %v411_v36, %v390_v33 }
  0x61   : > { %415 = vst.msk [vmem:[#allocation5] sm:$0x3] %vm414_vm3, %v413_v37 }
  0x62 PF: > { %p3177_p12 = scmp.ne.s32.totalorder %s3815_s30, 1 }
  0x64   : > { %419 = sbr.rel (%p3177_p12) target bundleno = 1280 (0x500), region = 136 }
  0x69   : > { %s3178_s18 = sshll.u32 %s3815_s30, 3  ;;  %v4631_v38 = vlaneseq  ;;  %v426_v41 = vld [vmem:[%s3859_s29] sm:$0xff]  ;;  %v427_v42 = vld [vmem:[%s3859_s29 + $0x8] sm:$0xff]  ;;  %vm433_vm4 = vcmask 261120   ;;  %vm450_vm6 = vcmask 1041409   ;;  %vm454_vm7 = vcmask 254976  }
  0x6a   : > { %s421_s27 = ssub.s32 12, %s3178_s18  ;;  %v432_v57 = vld [vmem:[#allocation5] sm:$0x3] }
  0x6b   : > { %v3924_v39 = vshrl.u32 %v4631_v38, 7  ;;  %v424_v40 = vstv %s421_s27 }
  0x6d   : > { %4712 = vst [vmem:[#allocation22_spill] sm:$0xff] %v3924_v39  ;;  %vm425_vm5 = vcmp.lt.s32.totalorder %v3924_v39, %v424_v40 }
  0x6e   : > { %v430_v43 = vsel %vm425_vm5, %v426_v41, 0.0  ;;  %v431_v44 = vsel %vm425_vm5, %v427_v42, 0.0 }
  0x6f   : > { %v434_v45 = vsel %vm433_vm4, %v430_v43, 0.0  ;;  %v441_v46 = vsel %vm433_vm4, %v431_v44, 0.0 }
  0x70   : > { %v435_v47 = vrot.slane %v434_v45, 4  ;;  %v442_v48 = vrot.slane %v441_v46, 4 }
  0x72   : > { %v436_v49 = vadd.f32 %v435_v47, %v434_v45  ;;  %v443_v50 = vadd.f32 %v442_v48, %v441_v46 }
  0x74   : > { %v437_v51 = vrot.slane %v436_v49, 2  ;;  %v444_v52 = vrot.slane %v443_v50, 2 }
  0x76   : > { %v438_v53 = vadd.f32 %v437_v51, %v436_v49  ;;  %v445_v54 = vadd.f32 %v444_v52, %v443_v50 }
  0x78   : > { %v439_v55 = vrot.slane %v438_v53, 1  ;;  %v446_v56 = vrot.slane %v445_v54, 1 }
  0x7a   : > { %v440_v58 = vadd.f32 %v439_v55, %v438_v53  ;;  %v447_v59 = vadd.f32 %v446_v56, %v445_v54 }
  0x7c   : > { %v451_v60 = vsel %vm450_vm6, %v447_v59, %v440_v58 }
  0x7d   : > { %v453_v61 = vadd.f32 %v451_v60, %v432_v57 }
  0x7f   : > { %455 = vst.msk [vmem:[#allocation5] sm:$0x3] %vm454_vm7, %v453_v61 }
  0x80   : > { %3723 = dma.done.wait [#allocation4], 2048 }
  0x81   : > { %3724 = vsyncadd [#allocation4], 4294965248 }
  0x82   : > { %3725 = dma.done.wait [#allocation4 + $0x1], 16384 }
  0x83   : > { %3726 = vsyncadd [#allocation4 + $0x1], 4294950912  ;;  %v4632_v62 = vmov 0   ;;  %v476_v63 = vld [vmem:[#allocation2 + $0x40] sm:$0xff]  ;;  %v468_v5 = vld [vmem:[#allocation2 + $0x30] sm:$0xff]  ;;  %vm3752_vm9 = vmmov 0  }
  0x84   : > { %641 = vmatprep.mubr.bf16.mxu0 %v4632_v62  ;;  %682 = vmatprep.mubr.bf16.mxu1 %v4632_v62  ;;  %v480_v0 = vld [vmem:[#allocation2 + $0x60] sm:$0xff]  ;;  %v472_v6 = vld [vmem:[#allocation2 + $0x50] sm:$0xff]  ;;  %v3614_v15 = vld [vmem:[#allocation2 + $0x3c] ss:$-16 sps:$4 sm:$0xff]   ;;  %vm3079_vm10 = vcmask 17408  }
  0x85   : > { %v3188_v1 = vcombine.high %v476_v63, %v480_v0  ;;  %v3603_v2 = vld [vmem:[#allocation2 + $0x24] ss:$80 sps:$4 sm:$0xff]   ;;  %v3187_v3 = vcombine.low %v476_v63, %v480_v0  ;;  %v3605_v4 = vld [vmem:[#allocation2 + $0x20] ss:$80 sps:$4 sm:$0xff]   ;;  %v3180_v7 = vcombine.high %v468_v5, %v472_v6  ;;  %v3179_v10 = vcombine.low %v468_v5, %v472_v6  ;;  %v3612_v17 = vld [vmem:[#allocation2 + $0x38] ss:$-16 sps:$4 sm:$0xff]  }
  0x86   : > { %662 = vmatprep.subr.bf16.mxu1 %v3603_v2  ;;  %v3606_v8 = vld [vmem:[#allocation2 + $0x4] ss:$104 sps:$4 sm:$0xff]   ;;  %v3608_v9 = vld [vmem:[#allocation2] ss:$104 sps:$4 sm:$0xff]   ;;  %v3611_v13 = vld [vmem:[#allocation2 + $0x14] ss:$104 sps:$4 sm:$0xff]  }
  0x87   : > { %621 = vmatprep.subr.bf16.mxu0 %v3188_v1  ;;  %663 = vmatpush1.bf16.msra.mxu1 %v3605_v4  ;;  %v465_v11 = vld [vmem:[#allocation5] sm:$0x3]  ;;  %v3609_v16 = vld [vmem:[#allocation2 + $0x10] ss:$104 sps:$4 sm:$0xff]   ;;  %v3617_v18 = vld [vmem:[#allocation2 + $0x5c] ss:$-80 sps:$4 sm:$0xff]  }
  0x88   : > { %622 = vmatpush1.bf16.msra.mxu0 %v3187_v3  ;;  %664 = vmatprep.subr.bf16.mxu1 %v3606_v8  ;;  %v466_v12 = vmul.f32 0.083333336, %v465_v11  ;;  %v3620_v19 = vld [vmem:[#allocation2 + $0x1c] ss:$48 sps:$4 sm:$0xff]   ;;  %v876_v20 = vld [vmem:[#allocation3 + $0x1c0] sm:$0xff] }
  0x89   : > { %623 = vmatprep.subr.bf16.mxu0 %v3180_v7  ;;  %v880_v21 = vld [vmem:[#allocation3 + $0x1e0] sm:$0xff]  ;;  %v877_v22 = vld [vmem:[#allocation3 + $0x1c8] sm:$0xff] }
  0x8a   : > { %v467_v14 = vpack.c.bf16 %v466_v12, %v466_v12  ;;  %v881_v23 = vld [vmem:[#allocation3 + $0x1e8] sm:$0xff]  ;;  %v3935_v26 = vcombine.high %v876_v20, %v880_v21  ;;  %v868_v28 = vld [vmem:[#allocation3 + $0x180] sm:$0xff]  ;;  %v3941_v32 = vcombine.low %v876_v20, %v880_v21 }
  0x8b   : > { %665 = vmatpush1.bf16.msra.mxu1 %v3608_v9  ;;  %v3615_v24 = vld [vmem:[#allocation2 + $0x58] ss:$-80 sps:$4 sm:$0xff]   ;;  %v3937_v27 = vcombine.high %v877_v22, %v881_v23  ;;  %v872_v29 = vld [vmem:[#allocation3 + $0x1a0] sm:$0xff]  ;;  %v3943_v33 = vcombine.low %v877_v22, %v881_v23 }
  0x8c   : > { %624 = vmatpush1.bf16.msra.mxu0 %v3179_v10  ;;  %744 = vmatprep.subr.bf16.mxu1 %v3614_v15  ;;  %v3618_v25 = vld [vmem:[#allocation2 + $0x18] ss:$48 sps:$4 sm:$0xff]   ;;  %v3947_v34 = vcombine.high %v868_v28, %v872_v29  ;;  %v860_v36 = vld [vmem:[#allocation3 + $0x140] sm:$0xff]  ;;  %v3955_v42 = vcombine.low %v868_v28, %v872_v29 }
  0x8d   : > { %703 = vmatprep.subr.bf16.mxu0 %v3611_v13  ;;  %v869_v30 = vld [vmem:[#allocation3 + $0x188] sm:$0xff]  ;;  %v864_v37 = vld [vmem:[#allocation3 + $0x160] sm:$0xff] }
  0x8e   : > { %3196 = vmatmul.mubr.msk.bf16.vlgmr.msra.gmra.mxu1 %vm433_vm4, %v467_v14  ;;  %v873_v31 = vld [vmem:[#allocation3 + $0x1a8] sm:$0xff]  ;;  %v3961_v44 = vcombine.high %v860_v36, %v864_v37  ;;  %v852_v46 = vld [vmem:[#allocation3 + $0x100] sm:$0xff]  ;;  %v3969_v50 = vcombine.low %v860_v36, %v864_v37 }
  0x8f   : > { %3195 = vmatmul.mubr.msk.bf16.vlgmr.msra.gmra.mxu0 %vm433_vm4, %v467_v14  ;;  %745 = vmatpush1.bf16.msra.mxu1 %v3612_v17  ;;  %v3949_v35 = vcombine.high %v869_v30, %v873_v31  ;;  %v861_v40 = vld [vmem:[#allocation3 + $0x148] sm:$0xff]  ;;  %v3957_v43 = vcombine.low %v869_v30, %v873_v31  ;;  %v856_v47 = vld [vmem:[#allocation3 + $0x120] sm:$0xff] }
  0x90   : > { %704 = vmatpush1.bf16.msra.mxu0 %v3609_v16  ;;  %746 = vmatprep.subr.bf16.mxu1 %v3620_v19  ;;  %v865_v41 = vld [vmem:[#allocation3 + $0x168] sm:$0xff]  ;;  %v3975_v52 = vcombine.high %v852_v46, %v856_v47  ;;  %v844_v54 = vld [vmem:[#allocation3 + $0xc0] sm:$0xff]  ;;  %v3981_v58 = vcombine.low %v852_v46, %v856_v47 }
  0x91   : > { %705 = vmatprep.subr.bf16.mxu0 %v3617_v18  ;;  %723 = vmatprep.mubr.bf16.mxu0 %v4632_v62  ;;  %v3963_v45 = vcombine.high %v861_v40, %v865_v41  ;;  %v853_v48 = vld [vmem:[#allocation3 + $0x108] sm:$0xff]  ;;  %v3971_v51 = vcombine.low %v861_v40, %v865_v41  ;;  %v848_v55 = vld [vmem:[#allocation3 + $0xe0] sm:$0xff] }
  0x92   : > { %764 = vmatprep.mubr.bf16.mxu1 %v4632_v62  ;;  %v857_v49 = vld [vmem:[#allocation3 + $0x128] sm:$0xff]  ;;  %v3987_v60 = vcombine.high %v844_v54, %v848_v55  ;;  %v836_v63 = vld [vmem:[#allocation3 + $0x80] sm:$0xff]  ;;  %v3993_v3 = vcombine.low %v844_v54, %v848_v55 }
  0x93   : > { %747 = vmatpush1.bf16.msra.mxu1 %v3618_v25  ;;  %v3977_v53 = vcombine.high %v853_v48, %v857_v49  ;;  %v845_v56 = vld [vmem:[#allocation3 + $0xc8] sm:$0xff]  ;;  %v3983_v59 = vcombine.low %v853_v48, %v857_v49  ;;  %v840_v0 = vld [vmem:[#allocation3 + $0xa0] sm:$0xff] }
  0x94   : > { %706 = vmatpush1.bf16.msra.mxu0 %v3615_v24  ;;  %1629 = vmatprep.subr.bf16.mxu1 %v3937_v27  ;;  %v849_v57 = vld [vmem:[#allocation3 + $0xe8] sm:$0xff]  ;;  %v3999_v5 = vcombine.high %v836_v63, %v840_v0  ;;  %v828_v7 = vld [vmem:[#allocation3 + $0x40] sm:$0xff]  ;;  %v4005_v11 = vcombine.low %v836_v63, %v840_v0 }
  0x95   : > { %1588 = vmatprep.subr.bf16.mxu0 %v3935_v26  ;;  %v3989_v61 = vcombine.high %v845_v56, %v849_v57  ;;  %v837_v1 = vld [vmem:[#allocation3 + $0x88] sm:$0xff]  ;;  %v3995_v4 = vcombine.low %v845_v56, %v849_v57  ;;  %v832_v8 = vld [vmem:[#allocation3 + $0x60] sm:$0xff] }
  0x96   : > { %3198 = vmatmul.mubr.msk.bf16.vlgmr.msra.gmra.mxu1 %vm433_vm4, %v467_v14  ;;  %v841_v2 = vld [vmem:[#allocation3 + $0xa8] sm:$0xff]  ;;  %v4011_v13 = vcombine.high %v828_v7, %v832_v8  ;;  %v820_v15 = vld [vmem:[#allocation3] sm:$0xff]  ;;  %v4017_v19 = vcombine.low %v828_v7, %v832_v8 }
  0x97   : > { %3197 = vmatmul.mubr.msk.bf16.vlgmr.msra.gmra.mxu0 %vm433_vm4, %v467_v14  ;;  %1630 = vmatpush1.bf16.msra.mxu1 %v3943_v33  ;;  %v4001_v6 = vcombine.high %v837_v1, %v841_v2  ;;  %v829_v9 = vld [vmem:[#allocation3 + $0x48] sm:$0xff]  ;;  %v4007_v12 = vcombine.low %v837_v1, %v841_v2  ;;  %v824_v16 = vld [vmem:[#allocation3 + $0x20] sm:$0xff] }
  0x98   : > { %1589 = vmatpush1.bf16.msra.mxu0 %v3941_v32  ;;  %1631 = vmatprep.subr.bf16.mxu1 %v3949_v35  ;;  %v833_v10 = vld [vmem:[#allocation3 + $0x68] sm:$0xff]  ;;  %v4023_v21 = vcombine.high %v820_v15, %v824_v16  ;;  %v940_v23 = vld [vmem:[#allocation3 + $0x3c0] sm:$0xff]  ;;  %v4029_v29 = vcombine.low %v820_v15, %v824_v16 }
  0x99   : > { %1590 = vmatprep.subr.bf16.mxu0 %v3947_v34  ;;  %1620 = vmatprep.mubr.bf16.mxu0 %v4632_v62  ;;  %v4013_v14 = vcombine.high %v829_v9, %v833_v10  ;;  %v821_v17 = vld [vmem:[#allocation3 + $0x8] sm:$0xff]  ;;  %v4019_v20 = vcombine.low %v829_v9, %v833_v10  ;;  %v944_v24 = vld [vmem:[#allocation3 + $0x3e0] sm:$0xff] }
  0x9a   : > { %1661 = vmatprep.mubr.bf16.mxu1 %v4632_v62  ;;  %v825_v18 = vld [vmem:[#allocation3 + $0x28] sm:$0xff]  ;;  %v4035_v31 = vcombine.high %v940_v23, %v944_v24  ;;  %v932_v37 = vld [vmem:[#allocation3 + $0x380] sm:$0xff]  ;;  %v4041_v47 = vcombine.low %v940_v23, %v944_v24 }
  0x9b   : > { %1632 = vmatpush1.bf16.msra.mxu1 %v3957_v43  ;;  %v4025_v22 = vcombine.high %v821_v17, %v825_v18  ;;  %v941_v25 = vld [vmem:[#allocation3 + $0x3c8] sm:$0xff]  ;;  %v4031_v30 = vcombine.low %v821_v17, %v825_v18  ;;  %v936_v40 = vld [vmem:[#allocation3 + $0x3a0] sm:$0xff] }
  0x9c   : > { %1591 = vmatpush1.bf16.msra.mxu0 %v3955_v42  ;;  %1633 = vmatprep.subr.bf16.mxu1 %v3963_v45  ;;  %v945_v28 = vld [vmem:[#allocation3 + $0x3e8] sm:$0xff]  ;;  %v4047_v49 = vcombine.high %v932_v37, %v936_v40  ;;  %v924_v55 = vld [vmem:[#allocation3 + $0x340] sm:$0xff]  ;;  %v4053_v0 = vcombine.low %v932_v37, %v936_v40 }
  0x9d   : > { %1592 = vmatprep.subr.bf16.mxu0 %v3961_v44  ;;  %v4037_v36 = vcombine.high %v941_v25, %v945_v28  ;;  %v933_v41 = vld [vmem:[#allocation3 + $0x388] sm:$0xff]  ;;  %v4043_v48 = vcombine.low %v941_v25, %v945_v28  ;;  %v928_v56 = vld [vmem:[#allocation3 + $0x360] sm:$0xff] }
  0x9e   : > { %v937_v46 = vld [vmem:[#allocation3 + $0x3a8] sm:$0xff]  ;;  %v4059_v2 = vcombine.high %v924_v55, %v928_v56  ;;  %v916_v8 = vld [vmem:[#allocation3 + $0x300] sm:$0xff]  ;;  %v4065_v16 = vcombine.low %v924_v55, %v928_v56 }
  0x9f   : > { %1634 = vmatpush1.bf16.msra.mxu1 %v3971_v51  ;;  %v4049_v54 = vcombine.high %v933_v41, %v937_v46  ;;  %v925_v57 = vld [vmem:[#allocation3 + $0x348] sm:$0xff]  ;;  %v4055_v1 = vcombine.low %v933_v41, %v937_v46  ;;  %v920_v9 = vld [vmem:[#allocation3 + $0x320] sm:$0xff] }
  0xa0   : > { %1593 = vmatpush1.bf16.msra.mxu0 %v3969_v50  ;;  %1635 = vmatprep.subr.bf16.mxu1 %v3977_v53  ;;  %v929_v63 = vld [vmem:[#allocation3 + $0x368] sm:$0xff]  ;;  %v4071_v18 = vcombine.high %v916_v8, %v920_v9  ;;  %v908_v24 = vld [vmem:[#allocation3 + $0x2c0] sm:$0xff]  ;;  %v4077_v40 = vcombine.low %v916_v8, %v920_v9 }
  0xa1   : > { %1594 = vmatprep.subr.bf16.mxu0 %v3975_v52  ;;  %v4061_v7 = vcombine.high %v925_v57, %v929_v63  ;;  %v917_v10 = vld [vmem:[#allocation3 + $0x308] sm:$0xff]  ;;  %v4067_v17 = vcombine.low %v925_v57, %v929_v63  ;;  %v912_v25 = vld [vmem:[#allocation3 + $0x2e0] sm:$0xff] }
  0xa2   : > { %v921_v15 = vld [vmem:[#allocation3 + $0x328] sm:$0xff]  ;;  %4714 = vst [vmem:[#allocation24_spill] sm:$0xff] %v4071_v18  ;;  %4716 = vst [vmem:[#allocation26_spill] sm:$0xff] %v4077_v40  ;;  %v4083_v46 = vcombine.high %v908_v24, %v912_v25  ;;  %v900_v56 = vld [vmem:[#allocation3 + $0x280] sm:$0xff]  ;;  %v4089_v8 = vcombine.low %v908_v24, %v912_v25 }
  0xa3   : > { %1636 = vmatpush1.bf16.msra.mxu1 %v3983_v59  ;;  %4713 = vst [vmem:[#allocation23_spill] sm:$0xff] %v4067_v17  ;;  %v4073_v23 = vcombine.high %v917_v10, %v921_v15  ;;  %v909_v28 = vld [vmem:[#allocation3 + $0x2c8] sm:$0xff]  ;;  %v4079_v41 = vcombine.low %v917_v10, %v921_v15  ;;  %v904_v57 = vld [vmem:[#allocation3 + $0x2a0] sm:$0xff] }
  0xa4   : > { %1595 = vmatpush1.bf16.msra.mxu0 %v3981_v58  ;;  %1637 = vmatprep.subr.bf16.mxu1 %v3989_v61  ;;  %v913_v37 = vld [vmem:[#allocation3 + $0x2e8] sm:$0xff]  ;;  %4718 = vst [vmem:[#allocation28_spill] sm:$0xff] %v4083_v46  ;;  %4720 = vst [vmem:[#allocation30_spill] sm:$0xff] %v4089_v8  ;;  %v4095_v10 = vcombine.high %v900_v56, %v904_v57  ;;  %v892_v62 = vld [vmem:[#allocation3 + $0x240] sm:$0xff]  ;;  %v4101_v24 = vcombine.low %v900_v56, %v904_v57 }
  0xa5   : > { %1596 = vmatprep.subr.bf16.mxu0 %v3987_v60  ;;  %4715 = vst [vmem:[#allocation25_spill] sm:$0xff] %v4073_v23  ;;  %4717 = vst [vmem:[#allocation27_spill] sm:$0xff] %v4079_v41  ;;  %v4085_v55 = vcombine.high %v909_v28, %v913_v37  ;;  %v901_v63 = vld [vmem:[#allocation3 + $0x288] sm:$0xff]  ;;  %v4091_v9 = vcombine.low %v909_v28, %v913_v37  ;;  %v896_v39 = vld [vmem:[#allocation3 + $0x260] sm:$0xff] }
  0xa6   : > { %v905_v38 = vld [vmem:[#allocation3 + $0x2a8] sm:$0xff]  ;;  %4722 = vst [vmem:[#allocation32_spill] sm:$0xff] %v4095_v10  ;;  %4724 = vst [vmem:[#allocation34_spill] sm:$0xff] %v4101_v24  ;;  %v4107_v28 = vcombine.high %v892_v62, %v896_v39  ;;  %v4113_v56 = vcombine.low %v892_v62, %v896_v39 }
  0xa7   : > { %1638 = vmatpush1.bf16.msra.mxu1 %v3995_v4  ;;  %4719 = vst [vmem:[#allocation29_spill] sm:$0xff] %v4085_v55  ;;  %4721 = vst [vmem:[#allocation31_spill] sm:$0xff] %v4091_v9  ;;  %v4097_v15 = vcombine.high %v901_v63, %v905_v38  ;;  %v4103_v25 = vcombine.low %v901_v63, %v905_v38 }
  0xa8   : > { %1597 = vmatpush1.bf16.msra.mxu0 %v3993_v3  ;;  %1639 = vmatprep.subr.bf16.mxu1 %v4001_v6  ;;  %4726 = vst [vmem:[#allocation36_spill] sm:$0xff] %v4107_v28  ;;  %4728 = vst [vmem:[#allocation38_spill] sm:$0xff] %v4113_v56 }
  0xa9   : > { %1598 = vmatprep.subr.bf16.mxu0 %v3999_v5  ;;  %4723 = vst [vmem:[#allocation33_spill] sm:$0xff] %v4097_v15  ;;  %4725 = vst [vmem:[#allocation35_spill] sm:$0xff] %v4103_v25 }
  0xab   : > { %1640 = vmatpush1.bf16.msra.mxu1 %v4007_v12 }
  0xac   : > { %1599 = vmatpush1.bf16.msra.mxu0 %v4005_v11  ;;  %1641 = vmatprep.subr.bf16.mxu1 %v4013_v14 }
  0xad   : > { %1600 = vmatprep.subr.bf16.mxu0 %v4011_v13 }
  0xaf   : > { %1642 = vmatpush1.bf16.msra.mxu1 %v4019_v20 }
  0xb0   : > { %1601 = vmatpush1.bf16.msra.mxu0 %v4017_v19  ;;  %1643 = vmatprep.subr.bf16.mxu1 %v4025_v22 }
  0xb1   : > { %1602 = vmatprep.subr.bf16.mxu0 %v4023_v21 }
  0xb3   : > { %1644 = vmatpush1.bf16.msra.mxu1 %v4031_v30 }
  0xb4   : > { %1603 = vmatpush1.bf16.msra.mxu0 %v4029_v29  ;;  %1645 = vmatprep.subr.bf16.mxu1 %v4037_v36 }
  0xb5   : > { %1604 = vmatprep.subr.bf16.mxu0 %v4035_v31 }
  0xb7   : > { %1646 = vmatpush2.bf16.msra.mxu1 %v4043_v48 }
  0xb8   : > { %1605 = vmatpush2.bf16.msra.mxu0 %v4041_v47  ;;  %1647 = vmatprep.subr.bf16.mxu1 %v4049_v54 }
  0xb9   : > { %1606 = vmatprep.subr.bf16.mxu0 %v4047_v49 }
  0xbb   : > { %1648 = vmatpush2.bf16.msra.mxu1 %v4055_v1 }
  0xbc   : > { %1607 = vmatpush2.bf16.msra.mxu0 %v4053_v0  ;;  %1649 = vmatprep.subr.bf16.mxu1 %v4061_v7 }
  0xbd   : > { %1608 = vmatprep.subr.bf16.mxu0 %v4059_v2 }
  0xbf   : > { %1650 = vmatpush2.bf16.msra.mxu1 %v4067_v17  ;;  %v4740_v17 = vmov 0  }
  0xc0   : > { %1609 = vmatpush2.bf16.msra.mxu0 %v4065_v16  ;;  %1651 = vmatprep.subr.bf16.mxu1 %v4073_v23  ;;  %v893_v23 = vld [vmem:[#allocation3 + $0x248] sm:$0xff] }
  0xc1   : > { %1610 = vmatprep.subr.bf16.mxu0 %v4071_v18  ;;  %v897_v18 = vld [vmem:[#allocation3 + $0x268] sm:$0xff] }
  0xc2   : > { %v4109_v37 = vcombine.high %v893_v23, %v897_v18  ;;  %v4115_v38 = vcombine.low %v893_v23, %v897_v18 }
  0xc3   : > { %1652 = vmatpush2.bf16.msra.mxu1 %v4079_v41  ;;  %v885_v41 = vld [vmem:[#allocation3 + $0x208] sm:$0xff] }
  0xc4   : > { %1611 = vmatpush2.bf16.msra.mxu0 %v4077_v40  ;;  %1653 = vmatprep.subr.bf16.mxu1 %v4085_v55  ;;  %4727 = vst [vmem:[#allocation37_spill] sm:$0xff] %v4109_v37  ;;  %v884_v55 = vld [vmem:[#allocation3 + $0x200] sm:$0xff]  ;;  %v889_v40 = vld [vmem:[#allocation3 + $0x228] sm:$0xff]  ;;  %4729 = vst [vmem:[#allocation39_spill] sm:$0xff] %v4115_v38 }
  0xc5   : > { %1612 = vmatprep.subr.bf16.mxu0 %v4083_v46  ;;  %v888_v46 = vld [vmem:[#allocation3 + $0x220] sm:$0xff]  ;;  %v4121_v63 = vcombine.high %v885_v41, %v889_v40  ;;  %v4127_v62 = vcombine.low %v885_v41, %v889_v40 }
  0xc6   : > { %v4119_v57 = vcombine.high %v884_v55, %v888_v46  ;;  %v4125_v39 = vcombine.low %v884_v55, %v888_v46 }
  0xc7   : > { %1654 = vmatpush2.bf16.msra.mxu1 %v4091_v9  ;;  %4731 = vst [vmem:[#allocation41_spill] sm:$0xff] %v4121_v63  ;;  %v879_v9 = vld [vmem:[#allocation3 + $0x1d8] sm:$0xff]  ;;  %4733 = vst [vmem:[#allocation43_spill] sm:$0xff] %v4127_v62 }
  0xc8   : > { %1613 = vmatpush2.bf16.msra.mxu0 %v4089_v8  ;;  %1655 = vmatprep.subr.bf16.mxu1 %v4097_v15  ;;  %4730 = vst [vmem:[#allocation40_spill] sm:$0xff] %v4119_v57  ;;  %v878_v15 = vld [vmem:[#allocation3 + $0x1d0] sm:$0xff]  ;;  %v883_v8 = vld [vmem:[#allocation3 + $0x1f8] sm:$0xff]  ;;  %4732 = vst [vmem:[#allocation42_spill] sm:$0xff] %v4125_v39 }
  0xc9   : > { %1614 = vmatprep.subr.bf16.mxu0 %v4095_v10  ;;  %v882_v10 = vld [vmem:[#allocation3 + $0x1f0] sm:$0xff]  ;;  %v4133_v23 = vcombine.high %v879_v9, %v883_v8  ;;  %v4139_v40 = vcombine.low %v879_v9, %v883_v8 }
  0xca   : > { %v4131_v18 = vcombine.high %v878_v15, %v882_v10  ;;  %v4137_v46 = vcombine.low %v878_v15, %v882_v10 }
  0xcb   : > { %1656 = vmatpush2.bf16.msra.mxu1 %v4103_v25  ;;  %4735 = vst [vmem:[#allocation45_spill] sm:$0xff] %v4133_v23  ;;  %v871_v25 = vld [vmem:[#allocation3 + $0x198] sm:$0xff]  ;;  %4737 = vst [vmem:[#allocation47_spill] sm:$0xff] %v4139_v40 }
  0xcc   : > { %1615 = vmatpush2.bf16.msra.mxu0 %v4101_v24  ;;  %1657 = vmatprep.subr.bf16.mxu1 %v4109_v37  ;;  %4734 = vst [vmem:[#allocation44_spill] sm:$0xff] %v4131_v18  ;;  %v870_v37 = vld [vmem:[#allocation3 + $0x190] sm:$0xff]  ;;  %v875_v24 = vld [vmem:[#allocation3 + $0x1b8] sm:$0xff]  ;;  %4736 = vst [vmem:[#allocation46_spill] sm:$0xff] %v4137_v46 }
  0xcd   : > { %1616 = vmatprep.subr.bf16.mxu0 %v4107_v28  ;;  %v874_v28 = vld [vmem:[#allocation3 + $0x1b0] sm:$0xff]  ;;  %v4145_v55 = vcombine.high %v871_v25, %v875_v24  ;;  %v4153_v9 = vcombine.low %v871_v25, %v875_v24 }
  0xce   : > { %v4143_v41 = vcombine.high %v870_v37, %v874_v28  ;;  %v4151_v8 = vcombine.low %v870_v37, %v874_v28 }
  0xcf   : > { %1658 = vmatpush2.bf16.msra.mxu1 %v4115_v38  ;;  %4739 = vst [vmem:[#allocation49_spill] sm:$0xff] %v4145_v55  ;;  %v863_v38 = vld [vmem:[#allocation3 + $0x158] sm:$0xff]  ;;  %4742 = vst [vmem:[#allocation51_spill] sm:$0xff] %v4153_v9 }
  0xd0   : > { %1617 = vmatpush2.bf16.msra.mxu0 %v4113_v56  ;;  %1659 = vmatprep.subr.bf16.mxu1 %v4121_v63  ;;  %4738 = vst [vmem:[#allocation48_spill] sm:$0xff] %v4143_v41  ;;  %v862_v63 = vld [vmem:[#allocation3 + $0x150] sm:$0xff]  ;;  %v867_v56 = vld [vmem:[#allocation3 + $0x178] sm:$0xff]  ;;  %4741 = vst [vmem:[#allocation50_spill] sm:$0xff] %v4151_v8 }
  0xd1   : > { %1618 = vmatprep.subr.bf16.mxu0 %v4119_v57  ;;  %v866_v57 = vld [vmem:[#allocation3 + $0x170] sm:$0xff]  ;;  %v4159_v15 = vcombine.high %v863_v38, %v867_v56  ;;  %v4167_v25 = vcombine.low %v863_v38, %v867_v56 }
  0xd2   : > { %v4157_v10 = vcombine.high %v862_v63, %v866_v57  ;;  %v4165_v24 = vcombine.low %v862_v63, %v866_v57 }
  0xd3   : > { %1660 = vmatpush2.bf16.msra.mxu1 %v4127_v62  ;;  %4744 = vst [vmem:[#allocation53_spill] sm:$0xff] %v4159_v15  ;;  %v855_v62 = vld [vmem:[#allocation3 + $0x118] sm:$0xff]  ;;  %4746 = vst [vmem:[#allocation55_spill] sm:$0xff] %v4167_v25 }
  0xd4   : > { %1619 = vmatpush2.bf16.msra.mxu0 %v4125_v39  ;;  %1711 = vmatprep.subr.bf16.mxu1 %v4133_v23  ;;  %4743 = vst [vmem:[#allocation52_spill] sm:$0xff] %v4157_v10  ;;  %v854_v23 = vld [vmem:[#allocation3 + $0x110] sm:$0xff]  ;;  %v859_v39 = vld [vmem:[#allocation3 + $0x138] sm:$0xff]  ;;  %4745 = vst [vmem:[#allocation54_spill] sm:$0xff] %v4165_v24 }
  0xd5   : > { %1670 = vmatprep.subr.bf16.mxu0 %v4131_v18  ;;  %v858_v18 = vld [vmem:[#allocation3 + $0x130] sm:$0xff]  ;;  %v4173_v37 = vcombine.high %v855_v62, %v859_v39  ;;  %v4179_v56 = vcombine.low %v855_v62, %v859_v39 }
  0xd6   : > { %1662 = vmatmul.mubr.bf16.vlgmr.msra.gmra.mxu1 %v4740_v17  ;;  %v4171_v28 = vcombine.high %v854_v23, %v858_v18  ;;  %v4177_v57 = vcombine.low %v854_v23, %v858_v18 }
  0xd7   : > { %1621 = vmatmul.mubr.bf16.vlgmr.msra.gmra.mxu0 %v4740_v17  ;;  %1712 = vmatpush1.bf16.msra.mxu1 %v4139_v40  ;;  %4748 = vst [vmem:[#allocation57_spill] sm:$0xff] %v4173_v37  ;;  %v847_v40 = vld [vmem:[#allocation3 + $0xd8] sm:$0xff]  ;;  %4750 = vst [vmem:[#allocation59_spill] sm:$0xff] %v4179_v56 }
  0xd8   : > { %1671 = vmatpush1.bf16.msra.mxu0 %v4137_v46  ;;  %1713 = vmatprep.subr.bf16.mxu1 %v4145_v55  ;;  %4747 = vst [vmem:[#allocation56_spill] sm:$0xff] %v4171_v28  ;;  %v846_v55 = vld [vmem:[#allocation3 + $0xd0] sm:$0xff]  ;;  %v851_v46 = vld [vmem:[#allocation3 + $0xf8] sm:$0xff]  ;;  %4749 = vst [vmem:[#allocation58_spill] sm:$0xff] %v4177_v57 }
  0xd9   : > { %1672 = vmatprep.subr.bf16.mxu0 %v4143_v41  ;;  %1702 = vmatprep.mubr.bf16.mxu0 %v4740_v17  ;;  %v850_v41 = vld [vmem:[#allocation3 + $0xf0] sm:$0xff]  ;;  %v4185_v63 = vcombine.high %v847_v40, %v851_v46  ;;  %v4191_v39 = vcombine.low %v847_v40, %v851_v46 }
  0xda   : > { %1743 = vmatprep.mubr.bf16.mxu1 %v4740_v17  ;;  %v4183_v38 = vcombine.high %v846_v55, %v850_v41  ;;  %v4189_v18 = vcombine.low %v846_v55, %v850_v41 }
  0xdb   : > { %1714 = vmatpush1.bf16.msra.mxu1 %v4153_v9  ;;  %4752 = vst [vmem:[#allocation61_spill] sm:$0xff] %v4185_v63  ;;  %v839_v9 = vld [vmem:[#allocation3 + $0x98] sm:$0xff]  ;;  %4754 = vst [vmem:[#allocation63_spill] sm:$0xff] %v4191_v39 }
  0xdc   : > { %1673 = vmatpush1.bf16.msra.mxu0 %v4151_v8  ;;  %1715 = vmatprep.subr.bf16.mxu1 %v4159_v15  ;;  %4751 = vst [vmem:[#allocation60_spill] sm:$0xff] %v4183_v38  ;;  %v838_v15 = vld [vmem:[#allocation3 + $0x90] sm:$0xff]  ;;  %v843_v8 = vld [vmem:[#allocation3 + $0xb8] sm:$0xff]  ;;  %4753 = vst [vmem:[#allocation62_spill] sm:$0xff] %v4189_v18 }
  0xdd   : > { %1674 = vmatprep.subr.bf16.mxu0 %v4157_v10  ;;  %v842_v10 = vld [vmem:[#allocation3 + $0xb0] sm:$0xff]  ;;  %v4197_v23 = vcombine.high %v839_v9, %v843_v8  ;;  %v4203_v46 = vcombine.low %v839_v9, %v843_v8 }
  0xde   : > { %v4195_v62 = vcombine.high %v838_v15, %v842_v10  ;;  %v4201_v41 = vcombine.low %v838_v15, %v842_v10 }
  0xdf   : > { %1716 = vmatpush1.bf16.msra.mxu1 %v4167_v25  ;;  %4756 = vst [vmem:[#allocation65_spill] sm:$0xff] %v4197_v23  ;;  %v831_v25 = vld [vmem:[#allocation3 + $0x58] sm:$0xff]  ;;  %4758 = vst [vmem:[#allocation67_spill] sm:$0xff] %v4203_v46 }
  0xe0   : > { %1675 = vmatpush1.bf16.msra.mxu0 %v4165_v24  ;;  %1717 = vmatprep.subr.bf16.mxu1 %v4173_v37  ;;  %4755 = vst [vmem:[#allocation64_spill] sm:$0xff] %v4195_v62  ;;  %v830_v37 = vld [vmem:[#allocation3 + $0x50] sm:$0xff]  ;;  %v835_v24 = vld [vmem:[#allocation3 + $0x78] sm:$0xff]  ;;  %4757 = vst [vmem:[#allocation66_spill] sm:$0xff] %v4201_v41 }
  0xe1   : > { %1676 = vmatprep.subr.bf16.mxu0 %v4171_v28  ;;  %v834_v28 = vld [vmem:[#allocation3 + $0x70] sm:$0xff]  ;;  %v4209_v55 = vcombine.high %v831_v25, %v835_v24  ;;  %v4215_v8 = vcombine.low %v831_v25, %v835_v24 }
  0xe2   : > { %v4207_v40 = vcombine.high %v830_v37, %v834_v28  ;;  %v4213_v10 = vcombine.low %v830_v37, %v834_v28 }
  0xe3   : > { %1718 = vmatpush1.bf16.msra.mxu1 %v4179_v56  ;;  %4760 = vst [vmem:[#allocation69_spill] sm:$0xff] %v4209_v55  ;;  %v823_v56 = vld [vmem:[#allocation3 + $0x18] sm:$0xff]  ;;  %4762 = vst [vmem:[#allocation71_spill] sm:$0xff] %v4215_v8 }
  0xe4   : > { %1677 = vmatpush1.bf16.msra.mxu0 %v4177_v57  ;;  %1719 = vmatprep.subr.bf16.mxu1 %v4185_v63  ;;  %4759 = vst [vmem:[#allocation68_spill] sm:$0xff] %v4207_v40  ;;  %v822_v63 = vld [vmem:[#allocation3 + $0x10] sm:$0xff]  ;;  %v827_v57 = vld [vmem:[#allocation3 + $0x38] sm:$0xff]  ;;  %4761 = vst [vmem:[#allocation70_spill] sm:$0xff] %v4213_v10 }
  0xe5   : > { %1678 = vmatprep.subr.bf16.mxu0 %v4183_v38  ;;  %v826_v38 = vld [vmem:[#allocation3 + $0x30] sm:$0xff]  ;;  %v4221_v15 = vcombine.high %v823_v56, %v827_v57  ;;  %v4227_v24 = vcombine.low %v823_v56, %v827_v57 }
  0xe6   : > { %v4219_v9 = vcombine.high %v822_v63, %v826_v38  ;;  %v4225_v28 = vcombine.low %v822_v63, %v826_v38 }
  0xe7   : > { %1720 = vmatpush1.bf16.msra.mxu1 %v4191_v39  ;;  %4764 = vst [vmem:[#allocation73_spill] sm:$0xff] %v4221_v15  ;;  %v943_v39 = vld [vmem:[#allocation3 + $0x3d8] sm:$0xff]  ;;  %4766 = vst [vmem:[#allocation75_spill] sm:$0xff] %v4227_v24 }
  0xe8   : > { %1679 = vmatpush1.bf16.msra.mxu0 %v4189_v18  ;;  %1721 = vmatprep.subr.bf16.mxu1 %v4197_v23  ;;  %4763 = vst [vmem:[#allocation72_spill] sm:$0xff] %v4219_v9  ;;  %v942_v23 = vld [vmem:[#allocation3 + $0x3d0] sm:$0xff]  ;;  %v947_v18 = vld [vmem:[#allocation3 + $0x3f8] sm:$0xff]  ;;  %4765 = vst [vmem:[#allocation74_spill] sm:$0xff] %v4225_v28 }
  0xe9   : > { %1680 = vmatprep.subr.bf16.mxu0 %v4195_v62  ;;  %v946_v62 = vld [vmem:[#allocation3 + $0x3f0] sm:$0xff]  ;;  %v4233_v37 = vcombine.high %v943_v39, %v947_v18  ;;  %v4239_v57 = vcombine.low %v943_v39, %v947_v18 }
  0xea   : > { %v4231_v25 = vcombine.high %v942_v23, %v946_v62  ;;  %v4237_v38 = vcombine.low %v942_v23, %v946_v62 }
  0xeb   : > { %1722 = vmatpush1.bf16.msra.mxu1 %v4203_v46  ;;  %4768 = vst [vmem:[#allocation77_spill] sm:$0xff] %v4233_v37  ;;  %v935_v46 = vld [vmem:[#allocation3 + $0x398] sm:$0xff]  ;;  %4770 = vst [vmem:[#allocation79_spill] sm:$0xff] %v4239_v57 }
  0xec   : > { %1681 = vmatpush1.bf16.msra.mxu0 %v4201_v41  ;;  %1723 = vmatprep.subr.bf16.mxu1 %v4209_v55  ;;  %4767 = vst [vmem:[#allocation76_spill] sm:$0xff] %v4231_v25  ;;  %v934_v55 = vld [vmem:[#allocation3 + $0x390] sm:$0xff]  ;;  %v939_v41 = vld [vmem:[#allocation3 + $0x3b8] sm:$0xff]  ;;  %4769 = vst [vmem:[#allocation78_spill] sm:$0xff] %v4237_v38 }
  0xed   : > { %1682 = vmatprep.subr.bf16.mxu0 %v4207_v40  ;;  %v938_v40 = vld [vmem:[#allocation3 + $0x3b0] sm:$0xff]  ;;  %v4245_v63 = vcombine.high %v935_v46, %v939_v41  ;;  %v4251_v18 = vcombine.low %v935_v46, %v939_v41 }
  0xee   : > { %v4243_v56 = vcombine.high %v934_v55, %v938_v40  ;;  %v4249_v62 = vcombine.low %v934_v55, %v938_v40 }
  0xef   : > { %1724 = vmatpush1.bf16.msra.mxu1 %v4215_v8  ;;  %4772 = vst [vmem:[#allocation81_spill] sm:$0xff] %v4245_v63  ;;  %v927_v8 = vld [vmem:[#allocation3 + $0x358] sm:$0xff]  ;;  %4774 = vst [vmem:[#allocation83_spill] sm:$0xff] %v4251_v18 }
  0xf0   : > { %1683 = vmatpush1.bf16.msra.mxu0 %v4213_v10  ;;  %1725 = vmatprep.subr.bf16.mxu1 %v4221_v15  ;;  %4771 = vst [vmem:[#allocation80_spill] sm:$0xff] %v4243_v56  ;;  %v926_v15 = vld [vmem:[#allocation3 + $0x350] sm:$0xff]  ;;  %v931_v10 = vld [vmem:[#allocation3 + $0x378] sm:$0xff]  ;;  %4773 = vst [vmem:[#allocation82_spill] sm:$0xff] %v4249_v62 }
  0xf1   : > { %1684 = vmatprep.subr.bf16.mxu0 %v4219_v9  ;;  %v930_v9 = vld [vmem:[#allocation3 + $0x370] sm:$0xff]  ;;  %v4257_v23 = vcombine.high %v927_v8, %v931_v10  ;;  %v4263_v41 = vcombine.low %v927_v8, %v931_v10 }
  0xf2   : > { %v4255_v39 = vcombine.high %v926_v15, %v930_v9  ;;  %v4261_v40 = vcombine.low %v926_v15, %v930_v9 }
  0xf3   : > { %1726 = vmatpush1.bf16.msra.mxu1 %v4227_v24  ;;  %4776 = vst [vmem:[#allocation85_spill] sm:$0xff] %v4257_v23  ;;  %v919_v24 = vld [vmem:[#allocation3 + $0x318] sm:$0xff]  ;;  %4778 = vst [vmem:[#allocation87_spill] sm:$0xff] %v4263_v41 }
  0xf4   : > { %1685 = vmatpush1.bf16.msra.mxu0 %v4225_v28  ;;  %1727 = vmatprep.subr.bf16.mxu1 %v4233_v37  ;;  %4775 = vst [vmem:[#allocation84_spill] sm:$0xff] %v4255_v39  ;;  %v918_v37 = vld [vmem:[#allocation3 + $0x310] sm:$0xff]  ;;  %v923_v28 = vld [vmem:[#allocation3 + $0x338] sm:$0xff]  ;;  %4777 = vst [vmem:[#allocation86_spill] sm:$0xff] %v4261_v40 }
  0xf5   : > { %1686 = vmatprep.subr.bf16.mxu0 %v4231_v25  ;;  %v922_v25 = vld [vmem:[#allocation3 + $0x330] sm:$0xff]  ;;  %v4269_v55 = vcombine.high %v919_v24, %v923_v28  ;;  %v4275_v10 = vcombine.low %v919_v24, %v923_v28 }
  0xf6   : > { %v4267_v46 = vcombine.high %v918_v37, %v922_v25  ;;  %v4273_v9 = vcombine.low %v918_v37, %v922_v25 }
  0xf7   : > { %1728 = vmatpush2.bf16.msra.mxu1 %v4239_v57  ;;  %4780 = vst [vmem:[#allocation89_spill] sm:$0xff] %v4269_v55  ;;  %v911_v57 = vld [vmem:[#allocation3 + $0x2d8] sm:$0xff]  ;;  %4782 = vst [vmem:[#allocation91_spill] sm:$0xff] %v4275_v10 }
  0xf8   : > { %1687 = vmatpush2.bf16.msra.mxu0 %v4237_v38  ;;  %1729 = vmatprep.subr.bf16.mxu1 %v4245_v63  ;;  %4779 = vst [vmem:[#allocation88_spill] sm:$0xff] %v4267_v46  ;;  %v910_v63 = vld [vmem:[#allocation3 + $0x2d0] sm:$0xff]  ;;  %v915_v38 = vld [vmem:[#allocation3 + $0x2f8] sm:$0xff]  ;;  %4781 = vst [vmem:[#allocation90_spill] sm:$0xff] %v4273_v9 }
  0xf9   : > { %1688 = vmatprep.subr.bf16.mxu0 %v4243_v56  ;;  %v914_v56 = vld [vmem:[#allocation3 + $0x2f0] sm:$0xff]  ;;  %v4281_v15 = vcombine.high %v911_v57, %v915_v38  ;;  %v4287_v28 = vcombine.low %v911_v57, %v915_v38 }
  0xfa   : > { %v4279_v8 = vcombine.high %v910_v63, %v914_v56  ;;  %v4285_v25 = vcombine.low %v910_v63, %v914_v56 }
  0xfb   : > { %1730 = vmatpush2.bf16.msra.mxu1 %v4251_v18  ;;  %4784 = vst [vmem:[#allocation93_spill] sm:$0xff] %v4281_v15  ;;  %v903_v18 = vld [vmem:[#allocation3 + $0x298] sm:$0xff] }
  0xfc   : > { %1689 = vmatpush2.bf16.msra.mxu0 %v4249_v62  ;;  %1731 = vmatprep.subr.bf16.mxu1 %v4257_v23  ;;  %4783 = vst [vmem:[#allocation92_spill] sm:$0xff] %v4279_v8  ;;  %v902_v23 = vld [vmem:[#allocation3 + $0x290] sm:$0xff]  ;;  %v907_v62 = vld [vmem:[#allocation3 + $0x2b8] sm:$0xff] }
  0xfd   : > { %1690 = vmatprep.subr.bf16.mxu0 %v4255_v39  ;;  %v906_v39 = vld [vmem:[#allocation3 + $0x2b0] sm:$0xff]  ;;  %v4293_v37 = vcombine.high %v903_v18, %v907_v62  ;;  %v4299_v38 = vcombine.low %v903_v18, %v907_v62 }
  0xfe   : > { %v4291_v24 = vcombine.high %v902_v23, %v906_v39  ;;  %v4297_v56 = vcombine.low %v902_v23, %v906_v39 }
  0xff   : > { %1732 = vmatpush2.bf16.msra.mxu1 %v4263_v41  ;;  %4785 = vst [vmem:[#allocation94_spill] sm:$0xff] %v4293_v37  ;;  %v895_v41 = vld [vmem:[#allocation3 + $0x258] sm:$0xff] }
 0x100   : > { %1691 = vmatpush2.bf16.msra.mxu0 %v4261_v40  ;;  %1733 = vmatprep.subr.bf16.mxu1 %v4269_v55  ;;  %v894_v55 = vld [vmem:[#allocation3 + $0x250] sm:$0xff]  ;;  %v899_v40 = vld [vmem:[#allocation3 + $0x278] sm:$0xff]  ;;  %4786 = vst [vmem:[#allocation95_spill] sm:$0xff] %v4297_v56 }
 0x101   : > { %1692 = vmatprep.subr.bf16.mxu0 %v4267_v46  ;;  %v898_v46 = vld [vmem:[#allocation3 + $0x270] sm:$0xff]  ;;  %v4305_v63 = vcombine.high %v895_v41, %v899_v40  ;;  %v4311_v62 = vcombine.low %v895_v41, %v899_v40 }
 0x102   : > { %v4303_v57 = vcombine.high %v894_v55, %v898_v46  ;;  %v4309_v39 = vcombine.low %v894_v55, %v898_v46 }
 0x103   : > { %1734 = vmatpush2.bf16.msra.mxu1 %v4275_v10  ;;  %v887_v10 = vld [vmem:[#allocation3 + $0x218] sm:$0xff] }
 0x104   : > { %1693 = vmatpush2.bf16.msra.mxu0 %v4273_v9  ;;  %1735 = vmatprep.subr.bf16.mxu1 %v4281_v15  ;;  %v886_v15 = vld [vmem:[#allocation3 + $0x210] sm:$0xff]  ;;  %v891_v9 = vld [vmem:[#allocation3 + $0x238] sm:$0xff] }
 0x105   : > { %1694 = vmatprep.subr.bf16.mxu0 %v4279_v8  ;;  %v890_v8 = vld [vmem:[#allocation3 + $0x230] sm:$0xff]  ;;  %v4317_v23 = vcombine.high %v887_v10, %v891_v9 }
 0x106   : > { %v4315_v18 = vcombine.high %v886_v15, %v890_v8 }
 0x107   : > { %1736 = vmatpush2.bf16.msra.mxu1 %v4287_v28 }
 0x108   : > { %1695 = vmatpush2.bf16.msra.mxu0 %v4285_v25  ;;  %1737 = vmatprep.subr.bf16.mxu1 %v4293_v37  ;;  %v4321_v37 = vcombine.low %v886_v15, %v890_v8  ;;  %v4807_v15 = vld [vmem:[#allocation42_spill] sm:$0xff] }
 0x109   : > { %1696 = vmatprep.subr.bf16.mxu0 %v4291_v24 }
 0x10b   : > { %1738 = vmatpush2.bf16.msra.mxu1 %v4299_v38 }
 0x10c   : > { %1697 = vmatpush2.bf16.msra.mxu0 %v4297_v56  ;;  %1739 = vmatprep.subr.bf16.mxu1 %v4305_v63  ;;  %v4323_v56 = vcombine.low %v887_v10, %v891_v9 }
 0x10d   : > { %1698 = vmatprep.subr.bf16.mxu0 %v4303_v57 }
 0x10f   : > { %1740 = vmatpush2.bf16.msra.mxu1 %v4311_v62 }
 0x110   : > { %1699 = vmatpush2.bf16.msra.mxu0 %v4309_v39  ;;  %1741 = vmatprep.subr.bf16.mxu1 %v4317_v23 }
 0x111   : > { %1700 = vmatprep.subr.bf16.mxu0 %v4315_v18 }
 0x113   : > { %1742 = vmatpush2.bf16.msra.mxu1 %v4323_v56 }
 0x114   : > { %1701 = vmatpush2.bf16.msra.mxu0 %v4321_v37  ;;  %2660 = vmatprep.subr.bf16.mxu1 %v3937_v27  ;;  %v4788_v27 = vld [vmem:[#allocation24_spill] sm:$0xff] }
 0x115   : > { %2619 = vmatprep.subr.bf16.mxu0 %v3935_v26  ;;  %v4787_v26 = vld [vmem:[#allocation23_spill] sm:$0xff] }
 0x116   : > { %1744 = vmatmul.mubr.bf16.vlgmr.msra.gmra.mxu1 %v4740_v17 }
 0x117   : > { %1703 = vmatmul.mubr.bf16.vlgmr.msra.gmra.mxu0 %v4740_v17  ;;  %2661 = vmatpush1.bf16.msra.mxu1 %v3943_v33  ;;  %v4790_v33 = vld [vmem:[#allocation26_spill] sm:$0xff] }
 0x118   : > { %2620 = vmatpush1.bf16.msra.mxu0 %v3941_v32  ;;  %2662 = vmatprep.subr.bf16.mxu1 %v3949_v35  ;;  %v4789_v32 = vld [vmem:[#allocation25_spill] sm:$0xff]  ;;  %v4792_v35 = vld [vmem:[#allocation28_spill] sm:$0xff] }
 0x119   : > { %2621 = vmatprep.subr.bf16.mxu0 %v3947_v34  ;;  %v4791_v34 = vld [vmem:[#allocation27_spill] sm:$0xff] }
 0x11b   : > { %2663 = vmatpush1.bf16.msra.mxu1 %v3957_v43  ;;  %v4794_v43 = vld [vmem:[#allocation22_spill] sm:$0xff] }
 0x11c   : > { %2622 = vmatpush1.bf16.msra.mxu0 %v3955_v42  ;;  %2664 = vmatprep.subr.bf16.mxu1 %v3963_v45  ;;  %v4793_v42 = vld [vmem:[#allocation29_spill] sm:$0xff]  ;;  %v496_v45 = vsub.s32 2, %v4794_v43  ;;  %v508_v17 = vsub.s32 5, %v4794_v43  ;;  %v516_v40 = vsub.s32 7, %v4794_v43 }
 0x11d   : > { %2623 = vmatprep.subr.bf16.mxu0 %v3961_v44  ;;  %v488_v44 = vsub.s32 0, %v4794_v43 }
 0x11f   : > { %2665 = vmatpush1.bf16.msra.mxu1 %v3971_v51  ;;  %v4796_v51 = vld [vmem:[#allocation31_spill] sm:$0xff] }
 0x120   : > { %2624 = vmatpush1.bf16.msra.mxu0 %v3969_v50  ;;  %2666 = vmatprep.subr.bf16.mxu1 %v3977_v53  ;;  %v4795_v50 = vld [vmem:[#allocation30_spill] sm:$0xff]  ;;  %v3749_v53 = vmov 1983009808  }
 0x121   : > { %2625 = vmatprep.subr.bf16.mxu0 %v3975_v52  ;;  %v484_v52 = vld [vmem:[%s4625_s3] sm:$0xff] }
 0x123   : > { %2667 = vmatpush1.bf16.msra.mxu1 %v3983_v59  ;;  %v4797_v59 = vld [vmem:[#allocation32_spill] sm:$0xff] }
 0x124   : > { %2626 = vmatpush1.bf16.msra.mxu0 %v3981_v58  ;;  %2668 = vmatprep.subr.bf16.mxu1 %v3989_v61  ;;  %v784_v58 = vunpack.c.l.s4 %v3749_v53  ;;  %v492_v61 = vsub.s32 1, %v4794_v43 }
 0x125   : > { %2627 = vmatprep.subr.bf16.mxu0 %v3987_v60  ;;  %v4798_v60 = vld [vmem:[#allocation33_spill] sm:$0xff] }
 0x127   : > { %2669 = vmatpush1.bf16.msra.mxu1 %v3995_v4  ;;  %v489_v4 = vrot.slane %v484_v52, %v488_v44 }
 0x128   : > { %2628 = vmatpush1.bf16.msra.mxu0 %v3993_v3  ;;  %2670 = vmatprep.subr.bf16.mxu1 %v4001_v6  ;;  %v500_v3 = vsub.s32 3, %v4794_v43  ;;  %v4799_v6 = vld [vmem:[#allocation34_spill] sm:$0xff] }
 0x129   : > { %2629 = vmatprep.subr.bf16.mxu0 %v3999_v5  ;;  %v497_v5 = vrot.slane %v484_v52, %v496_v45  ;;  %v509_v45 = vrot.slane %v484_v52, %v508_v17 }
 0x12b   : > { %2671 = vmatpush1.bf16.msra.mxu1 %v4007_v12  ;;  %v785_v12 = vunpack.c.0.s8 %v784_v58 }
 0x12c   : > { %2630 = vmatpush1.bf16.msra.mxu0 %v4005_v11  ;;  %2672 = vmatprep.subr.bf16.mxu1 %v4013_v14  ;;  %v4800_v11 = vld [vmem:[#allocation35_spill] sm:$0xff]  ;;  %v4802_v14 = vld [vmem:[#allocation37_spill] sm:$0xff] }
 0x12d   : > { %2631 = vmatprep.subr.bf16.mxu0 %v4011_v13  ;;  %v4801_v13 = vld [vmem:[#allocation36_spill] sm:$0xff] }
 0x12f   : > { %2673 = vmatpush1.bf16.msra.mxu1 %v4019_v20  ;;  %v501_v20 = vrot.slane %v484_v52, %v500_v3 }
 0x130   : > { %2632 = vmatpush1.bf16.msra.mxu0 %v4017_v19  ;;  %2674 = vmatprep.subr.bf16.mxu1 %v4025_v22  ;;  %v493_v19 = vrot.slane %v484_v52, %v492_v61 }
 0x131   : > { %2633 = vmatprep.subr.bf16.mxu0 %v4023_v21 }
 0x133   : > { %2675 = vmatpush1.bf16.msra.mxu1 %v4031_v30 }
 0x134   : > { %2634 = vmatpush1.bf16.msra.mxu0 %v4029_v29  ;;  %2676 = vmatprep.subr.bf16.mxu1 %v4037_v36  ;;  %v504_v29 = vsub.s32 4, %v4794_v43  ;;  %v512_v36 = vsub.s32 6, %v4794_v43 }
 0x135   : > { %2635 = vmatprep.subr.bf16.mxu0 %v4035_v31 }
 0x136   : > { %v505_v55 = vrot.slane %v484_v52, %v504_v29  ;;  %v513_v8 = vrot.slane %v484_v52, %v512_v36  ;;  %v3750_v29 = vmov 1966171168  }
 0x137   : > { %2677 = vmatpush2.bf16.msra.mxu1 %v4043_v48  ;;  %v4804_v48 = vld [vmem:[#allocation39_spill] sm:$0xff] }
 0x138   : > { %2636 = vmatpush2.bf16.msra.mxu0 %v4041_v47  ;;  %2678 = vmatprep.subr.bf16.mxu1 %v4049_v54  ;;  %v4803_v47 = vld [vmem:[#allocation38_spill] sm:$0xff]  ;;  %v4405_v54 = vsub.s32 %v785_v12, %v4794_v43 }
 0x139   : > { %2637 = vmatprep.subr.bf16.mxu0 %v4047_v49 }
 0x13b   : > { %2679 = vmatpush2.bf16.msra.mxu1 %v4055_v1  ;;  %v4805_v1 = vld [vmem:[#allocation40_spill] sm:$0xff] }
 0x13c   : > { %2638 = vmatpush2.bf16.msra.mxu0 %v4053_v0  ;;  %2680 = vmatprep.subr.bf16.mxu1 %v4061_v7 }
 0x13d   : > { %2639 = vmatprep.subr.bf16.mxu0 %v4059_v2  ;;  %v4806_v2 = vld [vmem:[#allocation41_spill] sm:$0xff] }
 0x13f   : > { %2681 = vmatpush2.bf16.msra.mxu1 %v4787_v26  ;;  %v4808_v26 = vld [vmem:[#allocation43_spill] sm:$0xff] }
 0x140   : > { %2640 = vmatpush2.bf16.msra.mxu0 %v4065_v16  ;;  %2682 = vmatprep.subr.bf16.mxu1 %v4789_v32 }
 0x141   : > { %2641 = vmatprep.subr.bf16.mxu0 %v4788_v27 }
 0x143   : > { %2683 = vmatpush2.bf16.msra.mxu1 %v4791_v34  ;;  %v4810_v34 = vld [vmem:[#allocation45_spill] sm:$0xff] }
 0x144   : > { %2642 = vmatpush2.bf16.msra.mxu0 %v4790_v33  ;;  %2684 = vmatprep.subr.bf16.mxu1 %v4793_v42  ;;  %v4809_v33 = vld [vmem:[#allocation44_spill] sm:$0xff] }
 0x145   : > { %2643 = vmatprep.subr.bf16.mxu0 %v4792_v35 }
 0x147   : > { %2685 = vmatpush2.bf16.msra.mxu1 %v4796_v51 }
 0x148   : > { %2644 = vmatpush2.bf16.msra.mxu0 %v4795_v50  ;;  %2686 = vmatprep.subr.bf16.mxu1 %v4798_v60  ;;  %v517_v50 = vrot.slane %v484_v52, %v516_v40 }
 0x149   : > { %2645 = vmatprep.subr.bf16.mxu0 %v4797_v59 }
 0x14b   : > { %2687 = vmatpush2.bf16.msra.mxu1 %v4800_v11 }
 0x14c   : > { %2646 = vmatpush2.bf16.msra.mxu0 %v4799_v6  ;;  %2688 = vmatprep.subr.bf16.mxu1 %v4802_v14 }
 0x14d   : > { %2647 = vmatprep.subr.bf16.mxu0 %v4801_v13 }
 0x14e   : > { %v684_v22 = vpop.f32.mrf.mxu1 }
 0x14f   : > { %v643_v21 = vpop.f32.mrf.mxu0  ;;  %v685_v31 = vadd.f32 %v684_v22, %v497_v5  ;;  %2689 = vmatpush2.bf16.msra.mxu1 %v4804_v48 }
 0x150   : > { %v644_v30 = vadd.f32 %v643_v21, %v489_v4  ;;  %2648 = vmatpush2.bf16.msra.mxu0 %v4803_v47  ;;  %v686_v0 = vpop.f32.mrf.mxu1  ;;  %2690 = vmatprep.subr.bf16.mxu1 %v4806_v2 }
 0x151   : > { %v645_v49 = vpop.f32.mrf.mxu0  ;;  %2649 = vmatprep.subr.bf16.mxu0 %v4805_v1  ;;  %v687_v16 = vadd.f32 %v686_v0, %v501_v20 }
 0x152   : > { %v646_v7 = vadd.f32 %v645_v49, %v493_v19  ;;  %v688_v46 = vpop.f32.mrf.mxu1 }
 0x153   : > { %v647_v41 = vpop.f32.mrf.mxu0  ;;  %v782_v10 = vcombine.low %v685_v31, %v687_v16  ;;  %2691 = vmatpush2.bf16.msra.mxu1 %v4808_v26 }
 0x154   : > { %v781_v9 = vcombine.low %v644_v30, %v646_v7  ;;  %2650 = vmatpush2.bf16.msra.mxu0 %v4807_v15  ;;  %v689_v32 = vpop.f32.mrf.mxu1  ;;  %2742 = vmatprep.subr.bf16.mxu1 %v4810_v34  ;;  %v1765_v30 = vunpack.c.l.s4 %v3750_v29  ;;  %v2986_v29 = vld [vmem:[%s4628_s6] sm:$0xff] }
 0x155   : > { %v648_v27 = vpop.f32.mrf.mxu0  ;;  %2701 = vmatprep.subr.bf16.mxu0 %v4809_v33  ;;  %v796_v42 = vrot.slane %v782_v10, %v4405_v54 }
 0x156   : > { %v789_v35 = vrot.slane %v781_v9, %v4405_v54  ;;  %v766_v53 = vpop.f32.mrf.mxu1  ;;  %v1766_v31 = vunpack.c.0.s8 %v1765_v30 }
 0x157   : > { %v725_v51 = vpop.f32.mrf.mxu0  ;;  %v767_v60 = vadd.f32 %v766_v53, %v513_v8 }
 0x158   : > { %v797_v58 = vcombine.low %v789_v35, %v796_v42  ;;  %v726_v59 = vadd.f32 %v725_v51, %v505_v55  ;;  %v768_v4 = vpop.f32.mrf.mxu1  ;;  %v4420_v48 = vsub.s32 %v1766_v31, %v4794_v43  ;;  %v4818_v43 = vld [vmem:[#allocation50_spill] sm:$0xff] }
 0x159   : > { %v727_v3 = vpop.f32.mrf.mxu0  ;;  %v769_v6 = vadd.f32 %v768_v4, %v517_v50 }
 0x15a   : > { %817 = vst [vmem:[#allocation6] sm:$0xff] %v797_v58  ;;  %v728_v5 = vadd.f32 %v727_v3, %v509_v45  ;;  %v770_v12 = vpop.f32.mrf.mxu1 }
 0x15b   : > { %v729_v11 = vpop.f32.mrf.mxu0  ;;  %v799_v14 = vcombine.low %v767_v60, %v769_v6 }
 0x15c   : > { %v798_v13 = vcombine.low %v726_v59, %v728_v5  ;;  %v771_v20 = vpop.f32.mrf.mxu1 }
 0x15d   : > { %v730_v19 = vpop.f32.mrf.mxu0  ;;  %v813_v52 = vrot.slane %v799_v14, %v4405_v54 }
 0x15e   : > { %v806_v21 = vrot.slane %v798_v13, %v4405_v54 }
 0x160   : > { %v814_v22 = vcombine.low %v806_v21, %v813_v52 }
 0x162   : > { %818 = vst [vmem:[#allocation6 + $0x8] sm:$0xff] %v814_v22  ;;  %v4811_v22 = vlaneseq }
 0x164   : > { %vm4432_vm8 = vcmp.lt.s32.totalorder %v4811_v22, 256  ;;  %v4856_v22 = vld [vmem:[#allocation88_spill] sm:$0xff] }
 0x169   : > { %v819_v59 = vld [vmem:[#allocation6] ss:$2 sm:$0xff] }
 0x196   : > { %v1663_v47 = vpop.f32.mrf.mxu1 }
 0x197   : > { %v1622_v36 = vpop.f32.mrf.mxu0 }
 0x198   : > { %v1665_v0 = vpop.f32.mrf.mxu1 }
 0x199   : > { %v1624_v49 = vpop.f32.mrf.mxu0  ;;  %v1761_v2 = vcombine.low %v1663_v47, %v1665_v0  ;;  %v4814_v0 = vld [vmem:[#allocation46_spill] sm:$0xff] }
 0x19a   : > { %v1760_v1 = vcombine.low %v1622_v36, %v1624_v49  ;;  %v1667_v16 = vpop.f32.mrf.mxu1 }
 0x19b   : > { %v1626_v7 = vpop.f32.mrf.mxu0  ;;  %v1777_v40 = vrot.slane %v1761_v2, %v4420_v48  ;;  %v4816_v2 = vld [vmem:[#allocation48_spill] sm:$0xff]  ;;  %v4821_v16 = vld [vmem:[#allocation53_spill] sm:$0xff] }
 0x19c   : > { %v1770_v17 = vrot.slane %v1760_v1, %v4420_v48  ;;  %v1668_v46 = vpop.f32.mrf.mxu1  ;;  %v4815_v1 = vld [vmem:[#allocation47_spill] sm:$0xff]  ;;  %v4820_v7 = vld [vmem:[#allocation52_spill] sm:$0xff] }
 0x19d   : > { %v1627_v41 = vpop.f32.mrf.mxu0  ;;  %v4825_v46 = vld [vmem:[#allocation57_spill] sm:$0xff] }
 0x19e   : > { %v1792_v55 = vcombine.low %v1770_v17, %v1777_v40  ;;  %v4822_v17 = vld [vmem:[#allocation54_spill] sm:$0xff]  ;;  %v4823_v40 = vld [vmem:[#allocation55_spill] sm:$0xff]  ;;  %v4824_v41 = vld [vmem:[#allocation56_spill] sm:$0xff] }
 0x1a0   : > { %v1800_v51 = vrot.slane %v1792_v55, %v4420_v48  ;;  %v4826_v55 = vld [vmem:[#allocation58_spill] sm:$0xff] }
 0x1d6   : > { %v1745_v10 = vpop.f32.mrf.mxu1 }
 0x1d7   : > { %v1704_v9 = vpop.f32.mrf.mxu0 }
 0x1d8   : > { %v1747_v15 = vpop.f32.mrf.mxu1 }
 0x1d9   : > { %v1706_v8 = vpop.f32.mrf.mxu0  ;;  %v1763_v27 = vcombine.low %v1745_v10, %v1747_v15  ;;  %v4828_v10 = vld [vmem:[#allocation60_spill] sm:$0xff]  ;;  %v4830_v15 = vld [vmem:[#allocation62_spill] sm:$0xff] }
 0x1da   : > { %v1762_v26 = vcombine.low %v1704_v9, %v1706_v8  ;;  %v1749_v33 = vpop.f32.mrf.mxu1  ;;  %v4827_v9 = vld [vmem:[#allocation59_spill] sm:$0xff]  ;;  %v4829_v8 = vld [vmem:[#allocation61_spill] sm:$0xff] }
 0x1db   : > { %v1708_v32 = vpop.f32.mrf.mxu0  ;;  %v1791_v35 = vrot.slane %v1763_v27, %v4420_v48  ;;  %v4832_v27 = vld [vmem:[#allocation64_spill] sm:$0xff]  ;;  %v4834_v33 = vld [vmem:[#allocation66_spill] sm:$0xff] }
 0x1dc   : > { %v1784_v34 = vrot.slane %v1762_v26, %v4420_v48  ;;  %v1750_v45 = vpop.f32.mrf.mxu1  ;;  %v4831_v26 = vld [vmem:[#allocation63_spill] sm:$0xff]  ;;  %v4833_v32 = vld [vmem:[#allocation65_spill] sm:$0xff] }
 0x1dd   : > { %v1709_v42 = vpop.f32.mrf.mxu0  ;;  %v4838_v45 = vld [vmem:[#allocation70_spill] sm:$0xff] }
 0x1de   : > { %v1793_v50 = vcombine.low %v1784_v34, %v1791_v35  ;;  %v4835_v34 = vld [vmem:[#allocation67_spill] sm:$0xff]  ;;  %v4836_v35 = vld [vmem:[#allocation68_spill] sm:$0xff]  ;;  %v4837_v42 = vld [vmem:[#allocation69_spill] sm:$0xff] }
 0x1e0   : > { %v1807_v53 = vrot.slane %v1793_v50, %v4420_v48  ;;  %v4839_v50 = vld [vmem:[#allocation71_spill] sm:$0xff] }
 0x1e2   : > { %v1808_v58 = vcombine.low %v1800_v51, %v1807_v53  ;;  %v4840_v51 = vld [vmem:[#allocation72_spill] sm:$0xff]  ;;  %v4841_v53 = vld [vmem:[#allocation73_spill] sm:$0xff] }
 0x1e4   : > { %v1810_v60 = vadd.f32 %v1808_v58, %v819_v59  ;;  %v4842_v58 = vld [vmem:[#allocation74_spill] sm:$0xff]  ;;  %v4843_v59 = vld [vmem:[#allocation75_spill] sm:$0xff] }
 0x1e6   : > { %v3327_v3 = vmul.f32 -1.442695, %v1810_v60  ;;  %v1818_v6 = vrot.slane %v1810_v60, 6  ;;  %v4844_v60 = vld [vmem:[#allocation76_spill] sm:$0xff] }
 0x1e8   : > { %3621 = vpow2.f32 %v3327_v3  ;;  %v4845_v3 = vld [vmem:[#allocation77_spill] sm:$0xff] }
 0x1f5   : > { %v3622_v4 = vpop.eup %3621 }
 0x1f6   : > { %v1814_v5 = vadd.f32 1.0, %v3622_v4  ;;  %v4846_v4 = vld [vmem:[#allocation78_spill] sm:$0xff] }
 0x1f8   : > { %3623 = vrcp.f32 %v1814_v5  ;;  %v4847_v5 = vld [vmem:[#allocation79_spill] sm:$0xff] }
 0x1f9   : > { %3625 = vtanh.f32 %v1818_v6  ;;  %v4848_v6 = vld [vmem:[#allocation80_spill] sm:$0xff] }
 0x205   : > { %v3624_v11 = vpop.eup %3623 }
 0x206   : > { %v1822_v12 = vrot.slane %v3624_v11, 2  ;;  %v3626_v13 = vpop.eup %3625  ;;  %v1828_v21 = vrot.slane %v3624_v11, 4 }
 0x207   : > { %v1825_v14 = vmul.f32 %v3626_v13, %v3624_v11  ;;  %v4849_v11 = vld [vmem:[#allocation81_spill] sm:$0xff]  ;;  %v4851_v13 = vld [vmem:[#allocation83_spill] sm:$0xff] }
 0x208   : > { %v1824_v19 = vmul.f32 0.0, %v1822_v12  ;;  %v4850_v12 = vld [vmem:[#allocation82_spill] sm:$0xff] }
 0x20a   : > { %v4428_v20 = vadd.f32 %v1825_v14, %v1824_v19  ;;  %v4852_v14 = vld [vmem:[#allocation84_spill] sm:$0xff]  ;;  %v4853_v19 = vld [vmem:[#allocation85_spill] sm:$0xff] }
 0x20c   : > { %3627 = vtanh.f32 %v4428_v20 }
 0x219   : > { %v3628_v52 = vpop.eup %3627 }
 0x21a   : > { %v1830_v30 = vmul.f32 %v3628_v52, %v1828_v21  ;;  %v4854_v21 = vld [vmem:[#allocation86_spill] sm:$0xff]  ;;  %v4855_v52 = vld [vmem:[#allocation87_spill] sm:$0xff] }
 0x21c   : > { %1835 = vst.msk [vmem:[#allocation7] ss:$2 sm:$0x3] %vm4432_vm8, %v1830_v30  ;;  %v1846_v31 = vrot.slane %v1830_v30, %v492_v61  ;;  %v1842_v36 = vrot.slane %v1830_v30, %v488_v44  ;;  %v4817_v61 = vld [vmem:[#allocation49_spill] sm:$0xff]  ;;  %v4819_v44 = vld [vmem:[#allocation51_spill] sm:$0xff] }
 0x21d   : > { %v4857_v30 = vld [vmem:[#allocation89_spill] sm:$0xff] }
 0x21e   : > { %v1850_v47 = vpack.c.bf16 %v1846_v31, %v1846_v31  ;;  %v4442_v49 = vpack.c.bf16 %v1842_v36, %v1842_v36  ;;  %v4858_v31 = vld [vmem:[#allocation90_spill] sm:$0xff]  ;;  %v4859_v36 = vld [vmem:[#allocation91_spill] sm:$0xff] }
 0x220   : > { %2651 = vmatprep.mubr.bf16.mxu0 %v1850_v47  ;;  %2692 = vmatprep.mubr.bf16.mxu1 %v1850_v47 }
 0x221   : > { %2652 = vmatmul.mubr.bf16.vlgmr.msra.gmra.mxu0 %v4442_v49  ;;  %2693 = vmatmul.mubr.bf16.vlgmr.msra.gmra.mxu1 %v4442_v49 }
 0x222   : > { %2702 = vmatpush1.bf16.msra.mxu0 %v4814_v0  ;;  %2743 = vmatpush1.bf16.msra.mxu1 %v4815_v1  ;;  %v4861_v0 = vld [vmem:[#allocation93_spill] sm:$0xff]  ;;  %v4862_v1 = vld [vmem:[#allocation94_spill] sm:$0xff] }
 0x223   : > { %2733 = vmatprep.mubr.bf16.mxu0 %v1850_v47  ;;  %2774 = vmatprep.mubr.bf16.mxu1 %v1850_v47  ;;  %v4860_v47 = vld [vmem:[#allocation92_spill] sm:$0xff] }
 0x224   : > { %2703 = vmatprep.subr.bf16.mxu0 %v4816_v2  ;;  %2744 = vmatprep.subr.bf16.mxu1 %v4817_v61  ;;  %v4863_v2 = vld [vmem:[#allocation95_spill] sm:$0xff] }
 0x226   : > { %2704 = vmatpush1.bf16.msra.mxu0 %v4818_v43  ;;  %2745 = vmatpush1.bf16.msra.mxu1 %v4819_v44  ;;  %v2891_v43 = vld [vmem:[#allocation9 + $0xc8] sm:$0xff] }
 0x227   : > { %2705 = vmatprep.subr.bf16.mxu0 %v4820_v7  ;;  %2746 = vmatprep.subr.bf16.mxu1 %v4821_v16  ;;  %v2875_v44 = vld [vmem:[#allocation9 + $0x48] sm:$0xff] }
 0x22a   : > { %2706 = vmatpush1.bf16.msra.mxu0 %v4822_v17  ;;  %2747 = vmatpush1.bf16.msra.mxu1 %v4823_v40  ;;  %v2890_v17 = vld [vmem:[#allocation9 + $0xc0] sm:$0xff] }
 0x22b   : > { %2707 = vmatprep.subr.bf16.mxu0 %v4824_v41  ;;  %2748 = vmatprep.subr.bf16.mxu1 %v4825_v46  ;;  %v2874_v46 = vld [vmem:[#allocation9 + $0x40] sm:$0xff] }
 0x22e   : > { %2708 = vmatpush1.bf16.msra.mxu0 %v4826_v55  ;;  %2749 = vmatpush1.bf16.msra.mxu1 %v4827_v9 }
 0x22f   : > { %2709 = vmatprep.subr.bf16.mxu0 %v4828_v10  ;;  %2750 = vmatprep.subr.bf16.mxu1 %v4829_v8  ;;  %v2889_v10 = vld [vmem:[#allocation9 + $0xb8] sm:$0xff] }
 0x232   : > { %2710 = vmatpush1.bf16.msra.mxu0 %v4830_v15  ;;  %2751 = vmatpush1.bf16.msra.mxu1 %v4831_v26  ;;  %v2873_v26 = vld [vmem:[#allocation9 + $0x38] sm:$0xff] }
 0x233   : > { %2711 = vmatprep.subr.bf16.mxu0 %v4832_v27  ;;  %2752 = vmatprep.subr.bf16.mxu1 %v4833_v32  ;;  %v2888_v27 = vld [vmem:[#allocation9 + $0xb0] sm:$0xff] }
 0x234   : > { %v2872_v32 = vld [vmem:[#allocation9 + $0x30] sm:$0xff] }
 0x236   : > { %2712 = vmatpush1.bf16.msra.mxu0 %v4834_v33  ;;  %2753 = vmatpush1.bf16.msra.mxu1 %v4835_v34 }
 0x237   : > { %2713 = vmatprep.subr.bf16.mxu0 %v4836_v35  ;;  %2754 = vmatprep.subr.bf16.mxu1 %v4837_v42  ;;  %v2887_v35 = vld [vmem:[#allocation9 + $0xa8] sm:$0xff] }
 0x23a   : > { %2714 = vmatpush1.bf16.msra.mxu0 %v4838_v45  ;;  %2755 = vmatpush1.bf16.msra.mxu1 %v4839_v50  ;;  %v2871_v45 = vld [vmem:[#allocation9 + $0x28] sm:$0xff]  ;;  %v2886_v50 = vld [vmem:[#allocation9 + $0xa0] sm:$0xff] }
 0x23b   : > { %2715 = vmatprep.subr.bf16.mxu0 %v4840_v51  ;;  %2756 = vmatprep.subr.bf16.mxu1 %v4841_v53  ;;  %v2870_v51 = vld [vmem:[#allocation9 + $0x20] sm:$0xff]  ;;  %v2885_v53 = vld [vmem:[#allocation9 + $0x98] sm:$0xff] }
 0x23e   : > { %2716 = vmatpush1.bf16.msra.mxu0 %v4842_v58  ;;  %2757 = vmatpush1.bf16.msra.mxu1 %v4843_v59  ;;  %v2869_v58 = vld [vmem:[#allocation9 + $0x18] sm:$0xff]  ;;  %v2884_v59 = vld [vmem:[#allocation9 + $0x90] sm:$0xff] }
 0x23f   : > { %2717 = vmatprep.subr.bf16.mxu0 %v4844_v60  ;;  %2758 = vmatprep.subr.bf16.mxu1 %v4845_v3  ;;  %v2868_v60 = vld [vmem:[#allocation9 + $0x10] sm:$0xff]  ;;  %v2883_v3 = vld [vmem:[#allocation9 + $0x88] sm:$0xff] }
 0x242   : > { %2718 = vmatpush2.bf16.msra.mxu0 %v4846_v4  ;;  %2759 = vmatpush2.bf16.msra.mxu1 %v4847_v5  ;;  %v2867_v4 = vld [vmem:[#allocation9 + $0x8] sm:$0xff]  ;;  %v2882_v5 = vld [vmem:[#allocation9 + $0x80] sm:$0xff] }
 0x243   : > { %2719 = vmatprep.subr.bf16.mxu0 %v4848_v6  ;;  %2760 = vmatprep.subr.bf16.mxu1 %v4849_v11  ;;  %v2866_v6 = vld [vmem:[#allocation9] sm:$0xff] }
 0x244   : > { %v3001_v11 = vld [vmem:[%s4628_s6 + $0x78] sm:$0xff] }
 0x246   : > { %2720 = vmatpush2.bf16.msra.mxu0 %v4850_v12  ;;  %2761 = vmatpush2.bf16.msra.mxu1 %v4851_v13  ;;  %v3751_v12 = vmov 0.0   ;;  %v3000_v13 = vld [vmem:[%s4628_s6 + $0x70] sm:$0xff] }
 0x247   : > { %2721 = vmatprep.subr.bf16.mxu0 %v4852_v14  ;;  %2762 = vmatprep.subr.bf16.mxu1 %v4853_v19  ;;  %v2999_v14 = vld [vmem:[%s4628_s6 + $0x68] sm:$0xff]  ;;  %v2998_v19 = vld [vmem:[%s4628_s6 + $0x60] sm:$0xff] }
 0x24a   : > { %2722 = vmatpush2.bf16.msra.mxu0 %v4854_v21  ;;  %2763 = vmatpush2.bf16.msra.mxu1 %v4855_v52  ;;  %v2997_v21 = vld [vmem:[%s4628_s6 + $0x58] sm:$0xff]  ;;  %v2996_v52 = vld [vmem:[%s4628_s6 + $0x50] sm:$0xff] }
 0x24b   : > { %2723 = vmatprep.subr.bf16.mxu0 %v4856_v22  ;;  %2764 = vmatprep.subr.bf16.mxu1 %v4857_v30  ;;  %v2995_v22 = vld [vmem:[%s4628_s6 + $0x48] sm:$0xff]  ;;  %v2994_v30 = vld [vmem:[%s4628_s6 + $0x40] sm:$0xff] }
 0x24e   : > { %2724 = vmatpush2.bf16.msra.mxu0 %v4858_v31  ;;  %2765 = vmatpush2.bf16.msra.mxu1 %v4859_v36  ;;  %v2993_v31 = vld [vmem:[%s4628_s6 + $0x38] sm:$0xff]  ;;  %v2992_v36 = vld [vmem:[%s4628_s6 + $0x30] sm:$0xff] }
 0x24f   : > { %2725 = vmatprep.subr.bf16.mxu0 %v4860_v47  ;;  %2766 = vmatprep.subr.bf16.mxu1 %v4861_v0  ;;  %v2991_v47 = vld [vmem:[%s4628_s6 + $0x28] sm:$0xff]  ;;  %v2990_v0 = vld [vmem:[%s4628_s6 + $0x20] sm:$0xff] }
 0x252   : > { %2726 = vmatpush2.bf16.msra.mxu0 %v4285_v25  ;;  %2767 = vmatpush2.bf16.msra.mxu1 %v4287_v28  ;;  %v2897_v25 = vld [vmem:[#allocation9 + $0xf8] sm:$0xff] }
 0x253   : > { %2727 = vmatprep.subr.bf16.mxu0 %v4291_v24  ;;  %2768 = vmatprep.subr.bf16.mxu1 %v4862_v1  ;;  %v2881_v28 = vld [vmem:[#allocation9 + $0x78] sm:$0xff]  ;;  %v2896_v24 = vld [vmem:[#allocation9 + $0xf0] sm:$0xff] }
 0x256   : > { %2728 = vmatpush2.bf16.msra.mxu0 %v4863_v2  ;;  %2769 = vmatpush2.bf16.msra.mxu1 %v4299_v38  ;;  %v2880_v38 = vld [vmem:[#allocation9 + $0x70] sm:$0xff] }
 0x257   : > { %2729 = vmatprep.subr.bf16.mxu0 %v4303_v57  ;;  %2770 = vmatprep.subr.bf16.mxu1 %v4305_v63  ;;  %v2895_v57 = vld [vmem:[#allocation9 + $0xe8] sm:$0xff] }
 0x258   : > { %v2879_v63 = vld [vmem:[#allocation9 + $0x68] sm:$0xff] }
 0x25a   : > { %2730 = vmatpush2.bf16.msra.mxu0 %v4309_v39  ;;  %2771 = vmatpush2.bf16.msra.mxu1 %v4311_v62  ;;  %v2894_v39 = vld [vmem:[#allocation9 + $0xe0] sm:$0xff]  ;;  %v2877_v62 = vld [vmem:[#allocation9 + $0x58] sm:$0xff] }
 0x25b   : > { %2731 = vmatprep.subr.bf16.mxu0 %v4315_v18  ;;  %2772 = vmatprep.subr.bf16.mxu1 %v4317_v23  ;;  %v2892_v18 = vld [vmem:[#allocation9 + $0xd0] sm:$0xff] }
 0x25c   : > { %v2876_v23 = vld [vmem:[#allocation9 + $0x50] sm:$0xff] }
 0x25e   : > { %2732 = vmatpush2.bf16.msra.mxu0 %v4321_v37  ;;  %2773 = vmatpush2.bf16.msra.mxu1 %v4323_v56  ;;  %v2878_v37 = vld [vmem:[#allocation9 + $0x60] sm:$0xff]  ;;  %v2893_v56 = vld [vmem:[#allocation9 + $0xd8] sm:$0xff] }
 0x25f   : > { %3465 = vmatprep.subr.mxu0 %v2897_v25  ;;  %3517 = vmatprep.subr.mxu1 %v3751_v12 }
 0x261   : > { %2734 = vmatmul.mubr.bf16.vlgmr.msra.gmra.mxu0 %v4442_v49  ;;  %2775 = vmatmul.mubr.bf16.vlgmr.msra.gmra.mxu1 %v4442_v49 }
 0x262   : > { %3466 = vmatpush3.msra.mxu0 %v2881_v28  ;;  %3518 = vmatpush3.msra.mxu1 %v3001_v11 }
 0x263   : > { %3467 = vmatprep.subr.mxu0 %v2896_v24  ;;  %3519 = vmatprep.subr.mxu1 %v3751_v12 }
 0x264   : > { %3468 = vmatpush3.msra.mxu0 %v2880_v38  ;;  %3520 = vmatpush3.msra.mxu1 %v3000_v13 }
 0x265   : > { %3469 = vmatprep.subr.mxu0 %v2895_v57  ;;  %3521 = vmatprep.subr.mxu1 %v3751_v12 }
 0x266   : > { %3470 = vmatpush3.msra.mxu0 %v2879_v63  ;;  %3522 = vmatpush3.msra.mxu1 %v2999_v14 }
 0x267   : > { %3471 = vmatprep.subr.mxu0 %v2894_v39  ;;  %3523 = vmatprep.subr.mxu1 %v3751_v12 }
 0x268   : > { %3472 = vmatpush3.msra.mxu0 %v2878_v37  ;;  %3524 = vmatpush3.msra.mxu1 %v2998_v19 }
 0x269   : > { %3473 = vmatprep.subr.mxu0 %v2893_v56  ;;  %3525 = vmatprep.subr.mxu1 %v3751_v12 }
 0x26a   : > { %3474 = vmatpush3.msra.mxu0 %v2877_v62  ;;  %3526 = vmatpush3.msra.mxu1 %v2997_v21 }
 0x26b   : > { %3475 = vmatprep.subr.mxu0 %v2892_v18  ;;  %3527 = vmatprep.subr.mxu1 %v3751_v12 }
 0x26c   : > { %3476 = vmatpush3.msra.mxu0 %v2876_v23  ;;  %3528 = vmatpush3.msra.mxu1 %v2996_v52 }
 0x26d   : > { %3477 = vmatprep.subr.mxu0 %v2891_v43  ;;  %3529 = vmatprep.subr.mxu1 %v3751_v12  ;;  %v1837_v43 = vld [vmem:[#allocation6 + $0x1] ss:$2 sm:$0xff] }
 0x26e   : > { %3478 = vmatpush3.msra.mxu0 %v2875_v44  ;;  %3530 = vmatpush3.msra.mxu1 %v2995_v22 }
 0x26f   : > { %3479 = vmatprep.subr.mxu0 %v2890_v17  ;;  %3531 = vmatprep.subr.mxu1 %v3751_v12 }
 0x270   : > { %3480 = vmatpush3.msra.mxu0 %v2874_v46  ;;  %3532 = vmatpush3.msra.mxu1 %v2994_v30 }
 0x271   : > { %3481 = vmatprep.subr.mxu0 %v2889_v10  ;;  %3533 = vmatprep.subr.mxu1 %v3751_v12 }
 0x272   : > { %3482 = vmatpush3.msra.mxu0 %v2873_v26  ;;  %3534 = vmatpush3.msra.mxu1 %v2993_v31 }
 0x273   : > { %3483 = vmatprep.subr.mxu0 %v2888_v27  ;;  %3535 = vmatprep.subr.mxu1 %v3751_v12 }
 0x274   : > { %3484 = vmatpush3.msra.mxu0 %v2872_v32  ;;  %3536 = vmatpush3.msra.mxu1 %v2992_v36 }
 0x275   : > { %3485 = vmatprep.subr.mxu0 %v2887_v35  ;;  %3537 = vmatprep.subr.mxu1 %v3751_v12  ;;  %v2988_v35 = vld [vmem:[%s4628_s6 + $0x10] sm:$0xff] }
 0x276   : > { %3486 = vmatpush3.msra.mxu0 %v2871_v45  ;;  %3538 = vmatpush3.msra.mxu1 %v2991_v47  ;;  %v3457_v45 = vld [vmem:[%s4627_s5] ss:$0 sm:$0xff] }
 0x277   : > { %3487 = vmatprep.subr.mxu0 %v2886_v50  ;;  %3539 = vmatprep.subr.mxu1 %v3751_v12 }
 0x278   : > { %3488 = vmatpush3.msra.mxu0 %v2870_v51  ;;  %3540 = vmatpush3.msra.mxu1 %v2990_v0 }
 0x279   : > { %3489 = vmatprep.subr.mxu0 %v2885_v53  ;;  %3541 = vmatprep.subr.mxu1 %v3751_v12 }
 0x27a   : > { %3490 = vmatpush3.msra.mxu0 %v2869_v58  ;;  %3549 = vmatprep.mubr.msk.f32.mxu1 %vm3752_vm9, %v3751_v12  ;;  %v3458_v58 = vld [vmem:[%s4629_s7] ss:$0 sm:$0xff] }
 0x27b   : > { %3491 = vmatprep.subr.mxu0 %v2884_v59 }
 0x27c   : > { %3492 = vmatpush3.msra.mxu0 %v2868_v60 }
 0x27d   : > { %3493 = vmatprep.subr.mxu0 %v2883_v3 }
 0x27e   : > { %3494 = vmatpush3.msra.mxu0 %v2867_v4 }
 0x27f   : > { %3495 = vmatprep.subr.mxu0 %v2882_v5 }
 0x280   : > { %3496 = vmatpush3.msra.mxu0 %v2866_v6 }
 0x2e1   : > { %v2653_v49 = vpop.f32.mrf.mxu0  ;;  %v2694_v61 = vpop.f32.mrf.mxu1 }
 0x2e3   : > { %v2655_v7 = vpop.f32.mrf.mxu0  ;;  %v2696_v16 = vpop.f32.mrf.mxu1 }
 0x2e4   : > { %v2791_v40 = vcombine.low %v2653_v49, %v2655_v7  ;;  %v2792_v41 = vcombine.low %v2694_v61, %v2696_v16 }
 0x2e5   : > { %v2657_v55 = vpop.f32.mrf.mxu0  ;;  %v2698_v9 = vpop.f32.mrf.mxu1 }
 0x2e6   : > { %v4511_v8 = vrot.slane %v2791_v40, %v4420_v48  ;;  %v4514_v15 = vrot.slane %v2792_v41, %v4420_v48 }
 0x2e7   : > { %v2658_v33 = vpop.f32.mrf.mxu0  ;;  %v2699_v34 = vpop.f32.mrf.mxu1 }
 0x2e8   : > { %v2823_v42 = vcombine.low %v4511_v8, %v4514_v15 }
 0x2ea   : > { %v2831_v23 = vrot.slane %v2823_v42, %v4420_v48 }
 0x321   : > { %v2735_v1 = vpop.f32.mrf.mxu0  ;;  %v2776_v2 = vpop.f32.mrf.mxu1 }
 0x323   : > { %v2737_v25 = vpop.f32.mrf.mxu0  ;;  %v2778_v28 = vpop.f32.mrf.mxu1 }
 0x324   : > { %v2793_v24 = vcombine.low %v2735_v1, %v2737_v25  ;;  %v2794_v38 = vcombine.low %v2776_v2, %v2778_v28 }
 0x325   : > { %v2739_v57 = vpop.f32.mrf.mxu0  ;;  %v2780_v63 = vpop.f32.mrf.mxu1 }
 0x326   : > { %v2815_v39 = vrot.slane %v2793_v24, %v4420_v48  ;;  %v2822_v37 = vrot.slane %v2794_v38, %v4420_v48 }
 0x327   : > { %v2740_v56 = vpop.f32.mrf.mxu0  ;;  %v2781_v62 = vpop.f32.mrf.mxu1 }
 0x328   : > { %v2824_v18 = vcombine.low %v2815_v39, %v2822_v37 }
 0x32a   : > { %v2838_v49 = vrot.slane %v2824_v18, %v4420_v48 }
 0x32c   : > { %v2839_v61 = vcombine.low %v2831_v23, %v2838_v49 }
 0x32e   : > { %v2841_v44 = vadd.f32 %v2839_v61, %v1837_v43 }
 0x330   : > { %v3456_v7 = vmul.f32 -1.442695, %v2841_v44  ;;  %v2849_v40 = vrot.slane %v2841_v44, 6 }
 0x332   : > { %3629 = vpow2.f32 %v3456_v7 }
 0x33f   : > { %v3630_v16 = vpop.eup %3629 }
 0x340   : > { %v2845_v17 = vadd.f32 1.0, %v3630_v16 }
 0x342   : > { %3631 = vrcp.f32 %v2845_v17 }
 0x343   : > { %3633 = vtanh.f32 %v2849_v40 }
 0x34f   : > { %v3632_v41 = vpop.eup %3631 }
 0x350   : > { %v2853_v46 = vrot.slane %v3632_v41, 2  ;;  %v3634_v55 = vpop.eup %3633  ;;  %v2859_v15 = vrot.slane %v3632_v41, 4 }
 0x351   : > { %v2856_v10 = vmul.f32 %v3634_v55, %v3632_v41 }
 0x352   : > { %v2855_v9 = vmul.f32 %v2853_v46, %v4428_v20  ;;  %v2989_v20 = vld [vmem:[%s4628_s6 + $0x18] sm:$0xff] }
 0x353   : > { %3542 = vmatpush3.msra.mxu1 %v2989_v20 }
 0x354   : > { %v2857_v8 = vadd.f32 %v2856_v10, %v2855_v9  ;;  %3543 = vmatprep.subr.mxu1 %v3751_v12 }
 0x355   : > { %3544 = vmatpush3.msra.mxu1 %v2988_v35 }
 0x356   : > { %3635 = vtanh.f32 %v2857_v8  ;;  %3545 = vmatprep.subr.mxu1 %v3751_v12 }
 0x363   : > { %v3636_v48 = vpop.eup %3635 }
 0x364   : > { %v2861_v26 = vmul.f32 %v3636_v48, %v2859_v15 }
 0x366   : > { %2863 = vst.msk [vmem:[#allocation7 + $0x1] ss:$2 sm:$0x3] %vm4432_vm8, %v2861_v26 }
 0x36d   : > { %v2864_v27 = vld [vmem:[#allocation7] sm:$0xf] }
 0x36e   : > { %v2865_v32 = vmax.f32 %v2864_v27, 0.0 }
 0x370   : > { %v2912_v33 = vrot.slane %v2865_v32, %v4405_v54  ;;  %v2987_v54 = vld [vmem:[%s4628_s6 + $0x8] sm:$0xff] }
 0x371   : > { %3546 = vmatpush3.msra.mxu1 %v2987_v54 }
 0x372   : > { %v2913_v34 = vcombine.high %v2912_v33, %v2912_v33  ;;  %3547 = vmatprep.subr.mxu1 %v3751_v12 }
 0x373   : > { %3548 = vmatpush3.msra.mxu1 %v2986_v29 }
 0x374   : > { %2980 = vmatprep.mubr.f32.mxu0 %v2913_v34 }
 0x375   : > { %2981 = vmatmul.mubr.f32.vlgmr.msra.gmra.mxu0 %v2912_v33 }
 0x435   : > { %v3497_v42 = vpop.f32.mrf.mxu0 }
 0x437   : > { %v3498_v50 = vpop.f32.mrf.mxu0 }
 0x438   : > { %v3499_v51 = vadd.f32 %v3498_v50, %v3497_v42 }
 0x43a   : > { %v2983_v53 = vadd.f32 %v3499_v51, %v3457_v45 }
 0x43c   : > { %3550 = vmatmul.mubr.f32.vlgmr.msra.gmra.mxu1 %v2983_v53 }
 0x4fc   : > { %v3075_v59 = vpop.f32.mrf.mxu1 }
 0x4fd   : > { %v3076_v60 = vadd.f32 %v3458_v58, %v3075_v59 }
 0x4fe   : > { %v3551_v3 = vpop.f32.mrf.mxu1 }
 0x4ff   : > { %3080 = vst.msk [vmem:[#allocation12] sm:$0x3] %vm3079_vm10, %v3076_v60 }
 0x500 PF: > { %p3566_p13 = scmp.eq.s32.totalorder %s3815_s30, 1  ;;  %s3753_s20 = smov [#allocation12]  }
 0x501   : > { %s3088_s21 = sshll.u32 %s3753_s20, 4  ;;  %s3089_s21 = int_to_ptr.vmem [resolvable:$true] %s3088_s21 }
 0x502   : > { %s3683_s22 = scalar_lea.vmem %s3089_s21, 32  ;;  %p3690_p3 = scmp.lt.s32.totalorder %s3089_s21, %s3089_s21 }
 0x503   : > { %p3684_p0 = scmp.ne.s32.totalorder %s3089_s21, %s3683_s22  ;;  %p3691_p5 = scmp.lt.s32.totalorder %s3683_s22, %s3683_s22 }
 0x505   : > { %p3685_p1 = pnand %p3684_p0, %p3566_p13  ;;  %p3692_p4 = por %p3691_p5, %p3690_p3 }
 0x507   : > { %p3686_p2 = pneg %p3685_p1 }
 0x509   : > { %p3693_p6 = pnand %p3692_p4, %p3686_p2 }
 0x50b   : > { %3696 = shalt.err (!%p3693_p6)
}
 0x50c   : > { %3557 = dma.vmem_to_hbm [thread:$0]  (%p3566_p13), %s3089_s21, 32, %s4630_s8, [#allocation11]  }
 0x50d   : > { %3728 = dma.done.wait (%p3566_p13), [#allocation11], 32  }
 0x50e   : > { %3730 = vsyncadd (%p3566_p13), [#allocation11], 4294967264 }
 0x50f PF: > { %p17_p7 = scmp.ge.s32.totalorder %s3818_s9, 4   ;;  %s4864_s27 = smov %s3737_s28 }
 0x510   : > { %s4865_s28 = smov %s3828_s12  ;;  %s4866_s29 = smov %s3818_s9 }
 0x511   :  { %19 = sbr.rel (!%p17_p7) target bundleno = 3 (0x3), region = 182 }
 0x516   :  { %3101 = vsyncpa [#allocation10], 1 }
 0x517   :  { %3103 = vsyncpa [#allocation10 + $0x1], 1 }
 0x518   :  { %3104 = vsyncpa [#allocation11], 1 }
 0x519   :  { %3106 = vsyncpa [#allocation11 + $0x1], 1 }
 0x51a   :  { %3107 = vsyncmov [#allocation4] }
 0x51d   :  { %s3108_s30 = vpop.sfrf %3107 }
 0x51e   :  { %p3463_p8 = scmp.ne.s32.totalorder %s3108_s30, 0 }
 0x520   :  { %3112 = shalt.err (%p3463_p8)  }
 0x521   :  { %3114 = vsyncmov [#allocation4 + $0x1] }
 0x524   :  { %s3115_s25 = vpop.sfrf %3114 }
 0x525   :  { %p3464_p9 = scmp.ne.s32.totalorder %s3115_s25, 0 }
 0x527   :  { %3119 = shalt.err (%p3464_p9)  }

</bundles_post_ra>
